<compile_context>
chip_gen: v7x
topology: tpu7x:2x2x1
jax: 0.10.0
libtpu: 0.0.40
codegen_flags: <defaults>
</compile_context>

<pallas_src>
import functools

import jax
import jax.numpy as jnp
from jax.experimental import pallas as pl
from jax.experimental.pallas import tpu as pltpu


# ---------------------------------------------------------------------------
# Fused ResNetBlock kernel (one grid step per batch sample, NCHW-flat layout)
# ---------------------------------------------------------------------------
def _resnet_kernel(*refs, H, W, num_groups, has_res_conv, fuse1, fuse2):
    if has_res_conv:
        (x_ref, t_ref,
         w1_ref, b1_ref, g1_ref, bb1_ref,
         wt_ref, bt_ref,
         w2_ref, b2_ref, g2_ref, bb2_ref,
         p_ref, wres_ref, bres_ref,
         o_ref) = refs
    else:
        (x_ref, t_ref,
         w1_ref, b1_ref, g1_ref, bb1_ref,
         wt_ref, bt_ref,
         w2_ref, b2_ref, g2_ref, bb2_ref,
         p_ref,
         o_ref) = refs

    HW = H * W
    cin = x_ref.shape[0]
    cout = o_ref.shape[0]
    inv_n = 1.0 / float(HW * (cout // num_groups))

    # Per-lane (row, col) indices of the flattened spatial axis, used for the
    # static border masks of the 9 conv taps (in-kernel iota instead of a
    # DMA'd mask input).  Float floor-divide avoids integer vector division.
    lane = jax.lax.broadcasted_iota(jnp.int32, (1, HW), 1).astype(jnp.float32)
    rowi = jnp.floor((lane + 0.5) * (1.0 / W))           # y = o // W
    coli = lane - rowi * W                               # x = o %  W

    def conv3x3(src, w_ref, ci, fuse):
        """3x3 'same' conv: 9 lane-rolled views + border masks -> MXU matmuls.

        src:   (ci, HW) f32 activations in NCHW-flat layout.
        w_ref: (cout, 9*ci) bf16; tap k = ky*3 + kx occupies cols [k*ci,(k+1)*ci).
        For output lane o (= y*W + x), tap (ky, kx) reads input lane
        o + (ky-1)*W + (kx-1); pltpu.roll supplies the shifted view (XLU slot,
        no unaligned slab slices) and static masks zero the out-of-image taps.
        """
        taps = []
        for ky in range(3):
            for kx in range(3):
                d = (ky - 1) * W + (kx - 1)
                v = src if d == 0 else pltpu.roll(src, shift=(-d) % HW, axis=1)
                conds = []
                if ky == 0:
                    conds.append(rowi > 0.5)             # needs y-1 >= 0
                if ky == 2:
                    conds.append(rowi < H - 1.5)         # needs y+1 <= H-1
                if kx == 0:
                    conds.append(coli > 0.5)             # needs x-1 >= 0
                if kx == 2:
                    conds.append(coli < W - 1.5)         # needs x+1 <= W-1
                if conds:
                    m = conds[0]
                    for c in conds[1:]:
                        m = jnp.logical_and(m, c)
                    v = jnp.where(m, v, 0.0)
                taps.append(v)
        if fuse:
            # Small sublane-aligned channel count: fuse taps along the
            # contraction (K = 9*ci) so one matmul feeds the MXU instead of
            # nine tiny-K matmuls.
            xcat = jnp.concatenate(taps, axis=0).astype(jnp.bfloat16)
            return jnp.dot(w_ref[...], xcat, preferred_element_type=jnp.float32)
        acc = jnp.zeros((cout, HW), jnp.float32)
        for k, tap in enumerate(taps):
            acc = acc + jnp.dot(w_ref[:, k * ci:(k + 1) * ci],
                                tap.astype(jnp.bfloat16),
                                preferred_element_type=jnp.float32)
        return acc

    proj = p_ref[...]                    # (cout, cout) group projection M @ M^T

    def gn_silu(y, gamma, beta):
        """GroupNorm (biased var, eps=1e-5) + SiLU, single-pass f32 statistics."""
        sum_c = jnp.sum(y, axis=1, keepdims=True)                    # (cout, 1)
        sq_c = jnp.sum(y * y, axis=1, keepdims=True)                 # (cout, 1)
        mean = jnp.dot(proj, sum_c, preferred_element_type=jnp.float32) * inv_n
        ey2 = jnp.dot(proj, sq_c, preferred_element_type=jnp.float32) * inv_n
        var = jnp.maximum(ey2 - mean * mean, 0.0)
        z = (y - mean) * jax.lax.rsqrt(var + 1e-5) * gamma + beta
        return z * jax.nn.sigmoid(z)

    x = x_ref[...]                                                   # (cin, HW) f32

    # ---- block1: conv3x3 + bias -> GroupNorm -> SiLU -------------------------
    h = gn_silu(conv3x3(x, w1_ref, cin, fuse1) + b1_ref[...],
                g1_ref[...], bb1_ref[...])

    # ---- time embedding: SiLU -> Linear, broadcast over all pixels (lanes) ---
    t = t_ref[...]                                                   # (Tc, 1) f32
    t = t * jax.nn.sigmoid(t)
    temb = jnp.dot(wt_ref[...], t.astype(jnp.bfloat16),
                   preferred_element_type=jnp.float32) + bt_ref[...]  # (cout, 1)
    h = h + temb

    # ---- block2: conv3x3 + bias -> GroupNorm -> SiLU -------------------------
    h2 = gn_silu(conv3x3(h, w2_ref, cout, fuse2) + b2_ref[...],
                 g2_ref[...], bb2_ref[...])

    # ---- residual: 1x1 conv (Cin != Cout) or exact f32 identity --------------
    if has_res_conv:
        res = jnp.dot(wres_ref[...], x.astype(jnp.bfloat16),
                      preferred_element_type=jnp.float32) + bres_ref[...]
    else:
        res = x

    # One lane-dense (cout, HW) store in flattened-NCHW layout (no junk pixels).
    # TODO(synk): emit bf16 here if the downstream consumer accepts it.
    o_ref[...] = h2 + res


# ---------------------------------------------------------------------------
# JAX-side wrapper (NCHW in, NCHW out, only free reshapes around the kernel)
# ---------------------------------------------------------------------------
@functools.partial(jax.jit, static_argnames=("num_groups",))
def resnet_block_forward(x_nchw, time_embedding, kp, *, num_groups):
    B, Cin, H, W = x_nchw.shape
    HW = H * W
    Cout = kp["b1"].shape[0]
    Tc = time_embedding.shape[-1]
    has_res_conv = "wres" in kp
    if not has_res_conv:
        assert Cin == Cout, "identity residual requires Cin == Cout"

    x_flat = x_nchw.reshape(B, Cin, HW).astype(jnp.float32)    # free reshape
    t3 = time_embedding.reshape(B, Tc, 1).astype(jnp.float32)

    def _const(a):
        return pl.BlockSpec(a.shape, lambda b, _n=a.ndim: (0,) * _n)

    inputs = [x_flat, t3,
              kp["w1"], kp["b1"], kp["g1"], kp["beta1"],
              kp["wt"], kp["bt"],
              kp["w2"], kp["b2"], kp["g2"], kp["beta2"],
              kp["P"]]
    in_specs = [pl.BlockSpec((None, Cin, HW), lambda b: (b, 0, 0)),
                pl.BlockSpec((None, Tc, 1), lambda b: (b, 0, 0))]
    in_specs += [_const(a) for a in inputs[2:]]
    if has_res_conv:
        inputs += [kp["wres"], kp["bres"]]
        in_specs += [_const(kp["wres"]), _const(kp["bres"])]

    kernel = functools.partial(
        _resnet_kernel, H=H, W=W, num_groups=num_groups,
        has_res_conv=has_res_conv,
        fuse1=(Cin % 8 == 0 and Cin <= 32),
        fuse2=(Cout % 8 == 0 and Cout <= 32))

    out = pl.pallas_call(
        kernel,
        out_shape=jax.ShapeDtypeStruct((B, Cout, HW), jnp.float32),
        grid=(B,),
        in_specs=in_specs,
        out_specs=pl.BlockSpec((None, Cout, HW), lambda b: (b, 0, 0)),
        compiler_params=pltpu.CompilerParams(
            dimension_semantics=("parallel",),        # B across TCs (megacore)
            vmem_limit_bytes=64 * 1024 * 1024),
    )(*inputs)

    return out.reshape(B, Cout, H, W)                 # free reshape back to NCHW


# ---------------------------------------------------------------------------
# Parameters: f32 "module" masters + one-time repack into kernel layout
# ---------------------------------------------------------------------------
def init_params(key, cin, cout, tc, groups):
    ks = jax.random.split(key, 12)
    p = dict(
        # conv weights (9, Cin, Cout): tap k = ky*3 + kx (HWIO order)
        w1=0.1 * jax.random.normal(ks[0], (9, cin, cout), jnp.float32),
        b1=0.05 * jax.random.normal(ks[1], (cout,), jnp.float32),
        g1=1.0 + 0.1 * jax.random.normal(ks[2], (cout,), jnp.float32),
        beta1=0.05 * jax.random.normal(ks[3], (cout,), jnp.float32),
        wt=0.1 * jax.random.normal(ks[4], (tc, cout), jnp.float32),
        bt=0.05 * jax.random.normal(ks[5], (cout,), jnp.float32),
        w2=0.1 * jax.random.normal(ks[6], (9, cout, cout), jnp.float32),
        b2=0.05 * jax.random.normal(ks[7], (cout,), jnp.float32),
        g2=1.0 + 0.1 * jax.random.normal(ks[8], (cout,), jnp.float32),
        beta2=0.05 * jax.random.normal(ks[9], (cout,), jnp.float32),
    )
    if cin != cout:   # nn.Conv2d(in, out, 1); otherwise nn.Identity (no params)
        p["wres"] = 0.1 * jax.random.normal(ks[10], (cin, cout), jnp.float32)
        p["bres"] = 0.05 * jax.random.normal(ks[11], (cout,), jnp.float32)
    return p


def prepare_kernel_params(p, *, num_groups):
    """One-time repack of module parameters into the kernel's (C, ...) layout."""
    cout = p["b1"].shape[0]
    cin = p["w1"].shape[1]
    cg = cout // num_groups
    grp = jnp.arange(cout) // cg
    P = (grp[:, None] == grp[None, :]).astype(jnp.float32)          # M @ M^T

    def col(v):
        return v.reshape(-1, 1).astype(jnp.float32)

    kp = dict(
        w1=p["w1"].reshape(9 * cin, cout).T.astype(jnp.bfloat16),   # (Cout, 9*Cin)
        w2=p["w2"].reshape(9 * cout, cout).T.astype(jnp.bfloat16),  # (Cout, 9*Cout)
        wt=p["wt"].T.astype(jnp.bfloat16),                          # (Cout, Tc)
        b1=col(p["b1"]), g1=col(p["g1"]), beta1=col(p["beta1"]),
        bt=col(p["bt"]),
        b2=col(p["b2"]), g2=col(p["g2"]), beta2=col(p["beta2"]),
        P=P,
    )
    if "wres" in p:
        kp["wres"] = p["wres"].T.astype(jnp.bfloat16)               # (Cout, Cin)
        kp["bres"] = col(p["bres"])
    return kp


# ---------------------------------------------------------------------------
# Pure-JAX full-precision reference (for verification)
# ---------------------------------------------------------------------------
def ref_forward(x_nchw, t_emb, p, *, num_groups):
    hp = jax.lax.Precision.HIGHEST
    x = jnp.transpose(x_nchw, (0, 2, 3, 1)).astype(jnp.float32)
    B, H, W, _ = x.shape
    Cout = p["w1"].shape[-1]
    G = num_groups

    def conv3(xin, w9, b):
        ci = w9.shape[1]
        w = w9.reshape(3, 3, ci, Cout)
        y = jax.lax.conv_general_dilated(
            xin, w, (1, 1), "SAME",
            dimension_numbers=("NHWC", "HWIO", "NHWC"), precision=hp)
        return y + b.reshape(1, 1, 1, Cout)

    def gn_silu(y, gamma, beta):
        yy = y.reshape(B, H * W, G, Cout // G)
        mean = yy.mean(axis=(1, 3), keepdims=True)
        var = ((yy - mean) ** 2).mean(axis=(1, 3), keepdims=True)
        z = ((yy - mean) / jnp.sqrt(var + 1e-5)).reshape(B, H, W, Cout)
        z = z * gamma.reshape(1, 1, 1, Cout) + beta.reshape(1, 1, 1, Cout)
        return z * jax.nn.sigmoid(z)

    h = gn_silu(conv3(x, p["w1"], p["b1"]), p["g1"], p["beta1"])
    t = t_emb * jax.nn.sigmoid(t_emb)
    temb = jnp.dot(t, p["wt"], precision=hp) + p["bt"]
    x2 = h + temb[:, None, None, :]
    h2 = gn_silu(conv3(x2, p["w2"], p["b2"]), p["g2"], p["beta2"])
    if "wres" in p:
        res = jnp.einsum("bhwi,io->bhwo", x, p["wres"],
                         precision=hp) + p["bres"].reshape(1, 1, 1, Cout)
    else:
        res = x
    return jnp.transpose(h2 + res, (0, 3, 1, 2))


# ---------------------------------------------------------------------------
if __name__ == "__main__":
    key = jax.random.PRNGKey(0)

    def run_case(cin, cout, H, W, tc, groups, tag):
        kx, kt, kparm = jax.random.split(jax.random.fold_in(key, tag), 3)
        x = jax.random.normal(kx, (2, cin, H, W), jnp.float32)
        t_emb = jax.random.normal(kt, (2, tc), jnp.float32)
        params = init_params(kparm, cin, cout, tc, groups)
        kp = prepare_kernel_params(params, num_groups=groups)

        out = resnet_block_forward(x, t_emb, kp, num_groups=groups)
        out = jax.block_until_ready(out)
        assert out.shape == (2, cout, H, W), out.shape

        ref = ref_forward(x, t_emb, params, num_groups=groups)
        max_err = float(jnp.max(jnp.abs(out - ref)))
        mean_err = float(jnp.mean(jnp.abs(out - ref)))
        # Kernel intentionally uses bf16 MXU operands (f32 accumulation / f32
        # GroupNorm), so compare against the f32 reference with a bf16 tolerance.
        assert jnp.allclose(out, ref, atol=5e-2, rtol=5e-2), (max_err, mean_err)
        assert mean_err < 1e-2, (max_err, mean_err)

    run_case(4, 8, 16, 16, 16, 4, 1)   # Cin != Cout : 1x1 residual-conv path
    run_case(8, 8, 16, 16, 16, 4, 2)   # Cin == Cout : identity-residual path

    print("KERNEL_OK")
</pallas_src>

<mosaic_0001>
module attributes {stable_mosaic.version = 11 : i64} {
  func.func @_resnet_kernel(%arg0: i32, %arg1: memref<1x4x256xf32, #tpu.memory_space<vmem>>, %arg2: memref<1x16x1xf32, #tpu.memory_space<vmem>>, %arg3: memref<8x36xbf16, #tpu.memory_space<vmem>>, %arg4: memref<8x1xf32, #tpu.memory_space<vmem>>, %arg5: memref<8x1xf32, #tpu.memory_space<vmem>>, %arg6: memref<8x1xf32, #tpu.memory_space<vmem>>, %arg7: memref<8x16xbf16, #tpu.memory_space<vmem>>, %arg8: memref<8x1xf32, #tpu.memory_space<vmem>>, %arg9: memref<8x72xbf16, #tpu.memory_space<vmem>>, %arg10: memref<8x1xf32, #tpu.memory_space<vmem>>, %arg11: memref<8x1xf32, #tpu.memory_space<vmem>>, %arg12: memref<8x1xf32, #tpu.memory_space<vmem>>, %arg13: memref<8x8xf32, #tpu.memory_space<vmem>>, %arg14: memref<8x4xbf16, #tpu.memory_space<vmem>>, %arg15: memref<8x1xf32, #tpu.memory_space<vmem>>, %arg16: memref<1x8x256xf32, #tpu.memory_space<vmem>>) attributes {dimension_semantics = [#tpu.dimension_semantics<parallel>], iteration_bounds = array<i64: 2>, scalar_prefetch = 0 : i64, scratch_operands = 0 : i64, tpu.core_type = #tpu.core_type<tc>, window_params = [{transform_indices = @transform_0, window_bounds = array<i64: 1, 4, 256>}, {transform_indices = @transform_1, window_bounds = array<i64: 1, 16, 1>}, {pipeline_mode = #tpu.pipeline_mode<synchronous>, transform_indices = @transform_2, window_bounds = array<i64: 8, 36>}, {pipeline_mode = #tpu.pipeline_mode<synchronous>, transform_indices = @transform_3, window_bounds = array<i64: 8, 1>}, {pipeline_mode = #tpu.pipeline_mode<synchronous>, transform_indices = @transform_4, window_bounds = array<i64: 8, 1>}, {pipeline_mode = #tpu.pipeline_mode<synchronous>, transform_indices = @transform_5, window_bounds = array<i64: 8, 1>}, {pipeline_mode = #tpu.pipeline_mode<synchronous>, transform_indices = @transform_6, window_bounds = array<i64: 8, 16>}, {pipeline_mode = #tpu.pipeline_mode<synchronous>, transform_indices = @transform_7, window_bounds = array<i64: 8, 1>}, {pipeline_mode = #tpu.pipeline_mode<synchronous>, transform_indices = @transform_8, window_bounds = array<i64: 8, 72>}, {pipeline_mode = #tpu.pipeline_mode<synchronous>, transform_indices = @transform_9, window_bounds = array<i64: 8, 1>}, {pipeline_mode = #tpu.pipeline_mode<synchronous>, transform_indices = @transform_10, window_bounds = array<i64: 8, 1>}, {pipeline_mode = #tpu.pipeline_mode<synchronous>, transform_indices = @transform_11, window_bounds = array<i64: 8, 1>}, {pipeline_mode = #tpu.pipeline_mode<synchronous>, transform_indices = @transform_12, window_bounds = array<i64: 8, 8>}, {pipeline_mode = #tpu.pipeline_mode<synchronous>, transform_indices = @transform_13, window_bounds = array<i64: 8, 4>}, {pipeline_mode = #tpu.pipeline_mode<synchronous>, transform_indices = @transform_14, window_bounds = array<i64: 8, 1>}, {transform_indices = @transform_15, window_bounds = array<i64: 1, 8, 256>}]} {
    %0 = tpu.iota {dimensions = array<i32: 1>} : vector<1x256xi32>
    %1 = arith.sitofp %0 : vector<1x256xi32> to vector<1x256xf32>
    %cst = arith.constant 5.000000e-01 : f32
    %2 = vector.broadcast %cst : f32 to vector<1x256xf32>
    %3 = arith.addf %1, %2 : vector<1x256xf32>
    %cst_0 = arith.constant 6.250000e-02 : f32
    %4 = vector.broadcast %cst_0 : f32 to vector<1x256xf32>
    %5 = arith.mulf %3, %4 : vector<1x256xf32>
    %6 = math.floor %5 : vector<1x256xf32>
    %cst_1 = arith.constant 1.600000e+01 : f32
    %7 = vector.broadcast %cst_1 : f32 to vector<1x256xf32>
    %8 = arith.mulf %6, %7 : vector<1x256xf32>
    %9 = arith.subf %1, %8 : vector<1x256xf32>
    %c0 = arith.constant 0 : index
    %c0_2 = arith.constant 0 : index
    %10 = vector.load %arg13[%c0, %c0_2] : memref<8x8xf32, #tpu.memory_space<vmem>>, vector<8x8xf32>
    %c0_3 = arith.constant 0 : index
    %c0_4 = arith.constant 0 : index
    %c0_5 = arith.constant 0 : index
    %11 = vector.load %arg1[%c0_3, %c0_4, %c0_5] : memref<1x4x256xf32, #tpu.memory_space<vmem>>, vector<1x4x256xf32>
    %12 = vector.shape_cast %11 : vector<1x4x256xf32> to vector<4x256xf32>
    %c17_i32 = arith.constant 17 : i32
    %13 = tpu.dynamic_rotate %12 by %c17_i32 dim 1 : vector<4x256xf32>, i32 -> vector<4x256xf32>
    %cst_6 = arith.constant 5.000000e-01 : f32
    %14 = vector.broadcast %cst_6 : f32 to vector<1x256xf32>
    %15 = arith.cmpf ogt, %6, %14 : vector<1x256xf32>
    %cst_7 = arith.constant 5.000000e-01 : f32
    %16 = vector.broadcast %cst_7 : f32 to vector<1x256xf32>
    %17 = arith.cmpf ogt, %9, %16 : vector<1x256xf32>
    %18 = arith.andi %15, %17 : vector<1x256xi1>
    %cst_8 = arith.constant 0.000000e+00 : f32
    %19 = vector.shape_cast %18 : vector<1x256xi1> to vector<1x256xi1>
    %20 = vector.broadcast %19 : vector<1x256xi1> to vector<4x256xi1>
    %21 = vector.broadcast %cst_8 : f32 to vector<4x256xf32>
    %22 = arith.select %20, %13, %21 : vector<4x256xi1>, vector<4x256xf32>
    %c16_i32 = arith.constant 16 : i32
    %23 = tpu.dynamic_rotate %12 by %c16_i32 dim 1 : vector<4x256xf32>, i32 -> vector<4x256xf32>
    %cst_9 = arith.constant 5.000000e-01 : f32
    %24 = vector.broadcast %cst_9 : f32 to vector<1x256xf32>
    %25 = arith.cmpf ogt, %6, %24 : vector<1x256xf32>
    %cst_10 = arith.constant 0.000000e+00 : f32
    %26 = vector.shape_cast %25 : vector<1x256xi1> to vector<1x256xi1>
    %27 = vector.broadcast %26 : vector<1x256xi1> to vector<4x256xi1>
    %28 = vector.broadcast %cst_10 : f32 to vector<4x256xf32>
    %29 = arith.select %27, %23, %28 : vector<4x256xi1>, vector<4x256xf32>
    %c15_i32 = arith.constant 15 : i32
    %30 = tpu.dynamic_rotate %12 by %c15_i32 dim 1 : vector<4x256xf32>, i32 -> vector<4x256xf32>
    %cst_11 = arith.constant 5.000000e-01 : f32
    %31 = vector.broadcast %cst_11 : f32 to vector<1x256xf32>
    %32 = arith.cmpf ogt, %6, %31 : vector<1x256xf32>
    %cst_12 = arith.constant 1.450000e+01 : f32
    %33 = vector.broadcast %cst_12 : f32 to vector<1x256xf32>
    %34 = arith.cmpf olt, %9, %33 : vector<1x256xf32>
    %35 = arith.andi %32, %34 : vector<1x256xi1>
    %cst_13 = arith.constant 0.000000e+00 : f32
    %36 = vector.shape_cast %35 : vector<1x256xi1> to vector<1x256xi1>
    %37 = vector.broadcast %36 : vector<1x256xi1> to vector<4x256xi1>
    %38 = vector.broadcast %cst_13 : f32 to vector<4x256xf32>
    %39 = arith.select %37, %30, %38 : vector<4x256xi1>, vector<4x256xf32>
    %c1_i32 = arith.constant 1 : i32
    %40 = tpu.dynamic_rotate %12 by %c1_i32 dim 1 : vector<4x256xf32>, i32 -> vector<4x256xf32>
    %cst_14 = arith.constant 5.000000e-01 : f32
    %41 = vector.broadcast %cst_14 : f32 to vector<1x256xf32>
    %42 = arith.cmpf ogt, %9, %41 : vector<1x256xf32>
    %cst_15 = arith.constant 0.000000e+00 : f32
    %43 = vector.shape_cast %42 : vector<1x256xi1> to vector<1x256xi1>
    %44 = vector.broadcast %43 : vector<1x256xi1> to vector<4x256xi1>
    %45 = vector.broadcast %cst_15 : f32 to vector<4x256xf32>
    %46 = arith.select %44, %40, %45 : vector<4x256xi1>, vector<4x256xf32>
    %c255_i32 = arith.constant 255 : i32
    %47 = tpu.dynamic_rotate %12 by %c255_i32 dim 1 : vector<4x256xf32>, i32 -> vector<4x256xf32>
    %cst_16 = arith.constant 1.450000e+01 : f32
    %48 = vector.broadcast %cst_16 : f32 to vector<1x256xf32>
    %49 = arith.cmpf olt, %9, %48 : vector<1x256xf32>
    %cst_17 = arith.constant 0.000000e+00 : f32
    %50 = vector.shape_cast %49 : vector<1x256xi1> to vector<1x256xi1>
    %51 = vector.broadcast %50 : vector<1x256xi1> to vector<4x256xi1>
    %52 = vector.broadcast %cst_17 : f32 to vector<4x256xf32>
    %53 = arith.select %51, %47, %52 : vector<4x256xi1>, vector<4x256xf32>
    %c241_i32 = arith.constant 241 : i32
    %54 = tpu.dynamic_rotate %12 by %c241_i32 dim 1 : vector<4x256xf32>, i32 -> vector<4x256xf32>
    %cst_18 = arith.constant 1.450000e+01 : f32
    %55 = vector.broadcast %cst_18 : f32 to vector<1x256xf32>
    %56 = arith.cmpf olt, %6, %55 : vector<1x256xf32>
    %cst_19 = arith.constant 5.000000e-01 : f32
    %57 = vector.broadcast %cst_19 : f32 to vector<1x256xf32>
    %58 = arith.cmpf ogt, %9, %57 : vector<1x256xf32>
    %59 = arith.andi %56, %58 : vector<1x256xi1>
    %cst_20 = arith.constant 0.000000e+00 : f32
    %60 = vector.shape_cast %59 : vector<1x256xi1> to vector<1x256xi1>
    %61 = vector.broadcast %60 : vector<1x256xi1> to vector<4x256xi1>
    %62 = vector.broadcast %cst_20 : f32 to vector<4x256xf32>
    %63 = arith.select %61, %54, %62 : vector<4x256xi1>, vector<4x256xf32>
    %c240_i32 = arith.constant 240 : i32
    %64 = tpu.dynamic_rotate %12 by %c240_i32 dim 1 : vector<4x256xf32>, i32 -> vector<4x256xf32>
    %cst_21 = arith.constant 1.450000e+01 : f32
    %65 = vector.broadcast %cst_21 : f32 to vector<1x256xf32>
    %66 = arith.cmpf olt, %6, %65 : vector<1x256xf32>
    %cst_22 = arith.constant 0.000000e+00 : f32
    %67 = vector.shape_cast %66 : vector<1x256xi1> to vector<1x256xi1>
    %68 = vector.broadcast %67 : vector<1x256xi1> to vector<4x256xi1>
    %69 = vector.broadcast %cst_22 : f32 to vector<4x256xf32>
    %70 = arith.select %68, %64, %69 : vector<4x256xi1>, vector<4x256xf32>
    %c239_i32 = arith.constant 239 : i32
    %71 = tpu.dynamic_rotate %12 by %c239_i32 dim 1 : vector<4x256xf32>, i32 -> vector<4x256xf32>
    %cst_23 = arith.constant 1.450000e+01 : f32
    %72 = vector.broadcast %cst_23 : f32 to vector<1x256xf32>
    %73 = arith.cmpf olt, %6, %72 : vector<1x256xf32>
    %cst_24 = arith.constant 1.450000e+01 : f32
    %74 = vector.broadcast %cst_24 : f32 to vector<1x256xf32>
    %75 = arith.cmpf olt, %9, %74 : vector<1x256xf32>
    %76 = arith.andi %73, %75 : vector<1x256xi1>
    %cst_25 = arith.constant 0.000000e+00 : f32
    %77 = vector.shape_cast %76 : vector<1x256xi1> to vector<1x256xi1>
    %78 = vector.broadcast %77 : vector<1x256xi1> to vector<4x256xi1>
    %79 = vector.broadcast %cst_25 : f32 to vector<4x256xf32>
    %80 = arith.select %78, %71, %79 : vector<4x256xi1>, vector<4x256xf32>
    %cst_26 = arith.constant 0.000000e+00 : f32
    %81 = vector.broadcast %cst_26 : f32 to vector<8x256xf32>
    %c0_27 = arith.constant 0 : index
    %c0_28 = arith.constant 0 : index
    %82 = vector.load %arg3[%c0_27, %c0_28] : memref<8x36xbf16, #tpu.memory_space<vmem>>, vector<8x4xbf16>
    %83 = arith.truncf %22 : vector<4x256xf32> to vector<4x256xbf16>
    %cst_29 = arith.constant dense<0.000000e+00> : vector<8x256xf32>
    %84 = tpu.matmul %82, %83, %cst_29 {dimension_numbers = #tpu.dot_dimension_numbers<[1], [0], [0], [1], [0, 0, 1, 1], [], []>} : vector<8x4xbf16>, vector<4x256xbf16>, vector<8x256xf32> -> vector<8x256xf32>
    %85 = arith.addf %81, %84 : vector<8x256xf32>
    %c0_30 = arith.constant 0 : index
    %c4 = arith.constant 4 : index
    %86 = vector.load %arg3[%c0_30, %c4] : memref<8x36xbf16, #tpu.memory_space<vmem>>, vector<8x4xbf16>
    %87 = arith.truncf %29 : vector<4x256xf32> to vector<4x256xbf16>
    %cst_31 = arith.constant dense<0.000000e+00> : vector<8x256xf32>
    %88 = tpu.matmul %86, %87, %cst_31 {dimension_numbers = #tpu.dot_dimension_numbers<[1], [0], [0], [1], [0, 0, 1, 1], [], []>} : vector<8x4xbf16>, vector<4x256xbf16>, vector<8x256xf32> -> vector<8x256xf32>
    %89 = arith.addf %85, %88 : vector<8x256xf32>
    %c0_32 = arith.constant 0 : index
    %c8 = arith.constant 8 : index
    %90 = vector.load %arg3[%c0_32, %c8] : memref<8x36xbf16, #tpu.memory_space<vmem>>, vector<8x4xbf16>
    %91 = arith.truncf %39 : vector<4x256xf32> to vector<4x256xbf16>
    %cst_33 = arith.constant dense<0.000000e+00> : vector<8x256xf32>
    %92 = tpu.matmul %90, %91, %cst_33 {dimension_numbers = #tpu.dot_dimension_numbers<[1], [0], [0], [1], [0, 0, 1, 1], [], []>} : vector<8x4xbf16>, vector<4x256xbf16>, vector<8x256xf32> -> vector<8x256xf32>
    %93 = arith.addf %89, %92 : vector<8x256xf32>
    %c0_34 = arith.constant 0 : index
    %c12 = arith.constant 12 : index
    %94 = vector.load %arg3[%c0_34, %c12] : memref<8x36xbf16, #tpu.memory_space<vmem>>, vector<8x4xbf16>
    %95 = arith.truncf %46 : vector<4x256xf32> to vector<4x256xbf16>
    %cst_35 = arith.constant dense<0.000000e+00> : vector<8x256xf32>
    %96 = tpu.matmul %94, %95, %cst_35 {dimension_numbers = #tpu.dot_dimension_numbers<[1], [0], [0], [1], [0, 0, 1, 1], [], []>} : vector<8x4xbf16>, vector<4x256xbf16>, vector<8x256xf32> -> vector<8x256xf32>
    %97 = arith.addf %93, %96 : vector<8x256xf32>
    %c0_36 = arith.constant 0 : index
    %c16 = arith.constant 16 : index
    %98 = vector.load %arg3[%c0_36, %c16] : memref<8x36xbf16, #tpu.memory_space<vmem>>, vector<8x4xbf16>
    %99 = arith.truncf %12 : vector<4x256xf32> to vector<4x256xbf16>
    %cst_37 = arith.constant dense<0.000000e+00> : vector<8x256xf32>
    %100 = tpu.matmul %98, %99, %cst_37 {dimension_numbers = #tpu.dot_dimension_numbers<[1], [0], [0], [1], [0, 0, 1, 1], [], []>} : vector<8x4xbf16>, vector<4x256xbf16>, vector<8x256xf32> -> vector<8x256xf32>
    %101 = arith.addf %97, %100 : vector<8x256xf32>
    %c0_38 = arith.constant 0 : index
    %c20 = arith.constant 20 : index
    %102 = vector.load %arg3[%c0_38, %c20] : memref<8x36xbf16, #tpu.memory_space<vmem>>, vector<8x4xbf16>
    %103 = arith.truncf %53 : vector<4x256xf32> to vector<4x256xbf16>
    %cst_39 = arith.constant dense<0.000000e+00> : vector<8x256xf32>
    %104 = tpu.matmul %102, %103, %cst_39 {dimension_numbers = #tpu.dot_dimension_numbers<[1], [0], [0], [1], [0, 0, 1, 1], [], []>} : vector<8x4xbf16>, vector<4x256xbf16>, vector<8x256xf32> -> vector<8x256xf32>
    %105 = arith.addf %101, %104 : vector<8x256xf32>
    %c0_40 = arith.constant 0 : index
    %c24 = arith.constant 24 : index
    %106 = vector.load %arg3[%c0_40, %c24] : memref<8x36xbf16, #tpu.memory_space<vmem>>, vector<8x4xbf16>
    %107 = arith.truncf %63 : vector<4x256xf32> to vector<4x256xbf16>
    %cst_41 = arith.constant dense<0.000000e+00> : vector<8x256xf32>
    %108 = tpu.matmul %106, %107, %cst_41 {dimension_numbers = #tpu.dot_dimension_numbers<[1], [0], [0], [1], [0, 0, 1, 1], [], []>} : vector<8x4xbf16>, vector<4x256xbf16>, vector<8x256xf32> -> vector<8x256xf32>
    %109 = arith.addf %105, %108 : vector<8x256xf32>
    %c0_42 = arith.constant 0 : index
    %c28 = arith.constant 28 : index
    %110 = vector.load %arg3[%c0_42, %c28] : memref<8x36xbf16, #tpu.memory_space<vmem>>, vector<8x4xbf16>
    %111 = arith.truncf %70 : vector<4x256xf32> to vector<4x256xbf16>
    %cst_43 = arith.constant dense<0.000000e+00> : vector<8x256xf32>
    %112 = tpu.matmul %110, %111, %cst_43 {dimension_numbers = #tpu.dot_dimension_numbers<[1], [0], [0], [1], [0, 0, 1, 1], [], []>} : vector<8x4xbf16>, vector<4x256xbf16>, vector<8x256xf32> -> vector<8x256xf32>
    %113 = arith.addf %109, %112 : vector<8x256xf32>
    %c0_44 = arith.constant 0 : index
    %c32 = arith.constant 32 : index
    %114 = vector.load %arg3[%c0_44, %c32] : memref<8x36xbf16, #tpu.memory_space<vmem>>, vector<8x4xbf16>
    %115 = arith.truncf %80 : vector<4x256xf32> to vector<4x256xbf16>
    %cst_45 = arith.constant dense<0.000000e+00> : vector<8x256xf32>
    %116 = tpu.matmul %114, %115, %cst_45 {dimension_numbers = #tpu.dot_dimension_numbers<[1], [0], [0], [1], [0, 0, 1, 1], [], []>} : vector<8x4xbf16>, vector<4x256xbf16>, vector<8x256xf32> -> vector<8x256xf32>
    %117 = arith.addf %113, %116 : vector<8x256xf32>
    %c0_46 = arith.constant 0 : index
    %c0_47 = arith.constant 0 : index
    %118 = vector.load %arg4[%c0_46, %c0_47] : memref<8x1xf32, #tpu.memory_space<vmem>>, vector<8x1xf32>
    %119 = vector.broadcast %118 : vector<8x1xf32> to vector<8x256xf32>
    %120 = arith.addf %117, %119 : vector<8x256xf32>
    %c0_48 = arith.constant 0 : index
    %c0_49 = arith.constant 0 : index
    %121 = vector.load %arg5[%c0_48, %c0_49] : memref<8x1xf32, #tpu.memory_space<vmem>>, vector<8x1xf32>
    %c0_50 = arith.constant 0 : index
    %c0_51 = arith.constant 0 : index
    %122 = vector.load %arg6[%c0_50, %c0_51] : memref<8x1xf32, #tpu.memory_space<vmem>>, vector<8x1xf32>
    %cst_52 = arith.constant dense<0.000000e+00> : vector<8xf32>
    %123 = vector.multi_reduction <add>, %120, %cst_52 [1] : vector<8x256xf32> to vector<8xf32>
    %124 = vector.shape_cast %123 : vector<8xf32> to vector<8x1xf32>
    %125 = arith.mulf %120, %120 : vector<8x256xf32>
    %cst_53 = arith.constant dense<0.000000e+00> : vector<8xf32>
    %126 = vector.multi_reduction <add>, %125, %cst_53 [1] : vector<8x256xf32> to vector<8xf32>
    %127 = vector.shape_cast %126 : vector<8xf32> to vector<8x1xf32>
    %cst_54 = arith.constant dense<0.000000e+00> : vector<8x1xf32>
    %128 = tpu.matmul %10, %124, %cst_54 {dimension_numbers = #tpu.dot_dimension_numbers<[1], [0], [0], [1], [0, 0, 1, 1], [], []>} : vector<8x8xf32>, vector<8x1xf32>, vector<8x1xf32> -> vector<8x1xf32>
    %cst_55 = arith.constant 0.001953125 : f32
    %129 = vector.broadcast %cst_55 : f32 to vector<8x1xf32>
    %130 = arith.mulf %128, %129 : vector<8x1xf32>
    %cst_56 = arith.constant dense<0.000000e+00> : vector<8x1xf32>
    %131 = tpu.matmul %10, %127, %cst_56 {dimension_numbers = #tpu.dot_dimension_numbers<[1], [0], [0], [1], [0, 0, 1, 1], [], []>} : vector<8x8xf32>, vector<8x1xf32>, vector<8x1xf32> -> vector<8x1xf32>
    %cst_57 = arith.constant 0.001953125 : f32
    %132 = vector.broadcast %cst_57 : f32 to vector<8x1xf32>
    %133 = arith.mulf %131, %132 : vector<8x1xf32>
    %134 = arith.mulf %130, %130 : vector<8x1xf32>
    %135 = arith.subf %133, %134 : vector<8x1xf32>
    %cst_58 = arith.constant 0.000000e+00 : f32
    %136 = vector.broadcast %cst_58 : f32 to vector<8x1xf32>
    %137 = arith.maximumf %135, %136 : vector<8x1xf32>
    %138 = vector.broadcast %130 : vector<8x1xf32> to vector<8x256xf32>
    %139 = arith.subf %120, %138 : vector<8x256xf32>
    %cst_59 = arith.constant 9.99999974E-6 : f32
    %140 = vector.broadcast %cst_59 : f32 to vector<8x1xf32>
    %141 = arith.addf %137, %140 : vector<8x1xf32>
    %142 = math.rsqrt %141 : vector<8x1xf32>
    %143 = vector.broadcast %142 : vector<8x1xf32> to vector<8x256xf32>
    %144 = arith.mulf %139, %143 : vector<8x256xf32>
    %145 = vector.broadcast %121 : vector<8x1xf32> to vector<8x256xf32>
    %146 = arith.mulf %144, %145 : vector<8x256xf32>
    %147 = vector.broadcast %122 : vector<8x1xf32> to vector<8x256xf32>
    %148 = arith.addf %146, %147 : vector<8x256xf32>
    %149 = arith.negf %148 : vector<8x256xf32>
    %150 = math.exp %149 : vector<8x256xf32>
    %cst_60 = arith.constant 1.000000e+00 : f32
    %151 = vector.broadcast %cst_60 : f32 to vector<8x256xf32>
    %152 = arith.addf %151, %150 : vector<8x256xf32>
    %153 = arith.divf %151, %152 : vector<8x256xf32>
    %154 = arith.mulf %148, %153 : vector<8x256xf32>
    %c0_61 = arith.constant 0 : index
    %c0_62 = arith.constant 0 : index
    %c0_63 = arith.constant 0 : index
    %155 = vector.load %arg2[%c0_61, %c0_62, %c0_63] : memref<1x16x1xf32, #tpu.memory_space<vmem>>, vector<1x16x1xf32>
    %156 = vector.shape_cast %155 : vector<1x16x1xf32> to vector<16x1xf32>
    %157 = arith.negf %156 : vector<16x1xf32>
    %158 = math.exp %157 : vector<16x1xf32>
    %cst_64 = arith.constant 1.000000e+00 : f32
    %159 = vector.broadcast %cst_64 : f32 to vector<16x1xf32>
    %160 = arith.addf %159, %158 : vector<16x1xf32>
    %161 = arith.divf %159, %160 : vector<16x1xf32>
    %162 = arith.mulf %156, %161 : vector<16x1xf32>
    %c0_65 = arith.constant 0 : index
    %c0_66 = arith.constant 0 : index
    %163 = vector.load %arg7[%c0_65, %c0_66] : memref<8x16xbf16, #tpu.memory_space<vmem>>, vector<8x16xbf16>
    %164 = arith.truncf %162 : vector<16x1xf32> to vector<16x1xbf16>
    %cst_67 = arith.constant dense<0.000000e+00> : vector<8x1xf32>
    %165 = tpu.matmul %163, %164, %cst_67 {dimension_numbers = #tpu.dot_dimension_numbers<[1], [0], [0], [1], [0, 0, 1, 1], [], []>} : vector<8x16xbf16>, vector<16x1xbf16>, vector<8x1xf32> -> vector<8x1xf32>
    %c0_68 = arith.constant 0 : index
    %c0_69 = arith.constant 0 : index
    %166 = vector.load %arg8[%c0_68, %c0_69] : memref<8x1xf32, #tpu.memory_space<vmem>>, vector<8x1xf32>
    %167 = arith.addf %165, %166 : vector<8x1xf32>
    %168 = vector.broadcast %167 : vector<8x1xf32> to vector<8x256xf32>
    %169 = arith.addf %154, %168 : vector<8x256xf32>
    %c17_i32_70 = arith.constant 17 : i32
    %170 = tpu.dynamic_rotate %169 by %c17_i32_70 dim 1 : vector<8x256xf32>, i32 -> vector<8x256xf32>
    %cst_71 = arith.constant 5.000000e-01 : f32
    %171 = vector.broadcast %cst_71 : f32 to vector<1x256xf32>
    %172 = arith.cmpf ogt, %6, %171 : vector<1x256xf32>
    %cst_72 = arith.constant 5.000000e-01 : f32
    %173 = vector.broadcast %cst_72 : f32 to vector<1x256xf32>
    %174 = arith.cmpf ogt, %9, %173 : vector<1x256xf32>
    %175 = arith.andi %172, %174 : vector<1x256xi1>
    %cst_73 = arith.constant 0.000000e+00 : f32
    %176 = vector.shape_cast %175 : vector<1x256xi1> to vector<1x256xi1>
    %177 = vector.broadcast %176 : vector<1x256xi1> to vector<8x256xi1>
    %178 = vector.broadcast %cst_73 : f32 to vector<8x256xf32>
    %179 = arith.select %177, %170, %178 : vector<8x256xi1>, vector<8x256xf32>
    %c16_i32_74 = arith.constant 16 : i32
    %180 = tpu.dynamic_rotate %169 by %c16_i32_74 dim 1 : vector<8x256xf32>, i32 -> vector<8x256xf32>
    %cst_75 = arith.constant 5.000000e-01 : f32
    %181 = vector.broadcast %cst_75 : f32 to vector<1x256xf32>
    %182 = arith.cmpf ogt, %6, %181 : vector<1x256xf32>
    %cst_76 = arith.constant 0.000000e+00 : f32
    %183 = vector.shape_cast %182 : vector<1x256xi1> to vector<1x256xi1>
    %184 = vector.broadcast %183 : vector<1x256xi1> to vector<8x256xi1>
    %185 = vector.broadcast %cst_76 : f32 to vector<8x256xf32>
    %186 = arith.select %184, %180, %185 : vector<8x256xi1>, vector<8x256xf32>
    %c15_i32_77 = arith.constant 15 : i32
    %187 = tpu.dynamic_rotate %169 by %c15_i32_77 dim 1 : vector<8x256xf32>, i32 -> vector<8x256xf32>
    %cst_78 = arith.constant 5.000000e-01 : f32
    %188 = vector.broadcast %cst_78 : f32 to vector<1x256xf32>
    %189 = arith.cmpf ogt, %6, %188 : vector<1x256xf32>
    %cst_79 = arith.constant 1.450000e+01 : f32
    %190 = vector.broadcast %cst_79 : f32 to vector<1x256xf32>
    %191 = arith.cmpf olt, %9, %190 : vector<1x256xf32>
    %192 = arith.andi %189, %191 : vector<1x256xi1>
    %cst_80 = arith.constant 0.000000e+00 : f32
    %193 = vector.shape_cast %192 : vector<1x256xi1> to vector<1x256xi1>
    %194 = vector.broadcast %193 : vector<1x256xi1> to vector<8x256xi1>
    %195 = vector.broadcast %cst_80 : f32 to vector<8x256xf32>
    %196 = arith.select %194, %187, %195 : vector<8x256xi1>, vector<8x256xf32>
    %c1_i32_81 = arith.constant 1 : i32
    %197 = tpu.dynamic_rotate %169 by %c1_i32_81 dim 1 : vector<8x256xf32>, i32 -> vector<8x256xf32>
    %cst_82 = arith.constant 5.000000e-01 : f32
    %198 = vector.broadcast %cst_82 : f32 to vector<1x256xf32>
    %199 = arith.cmpf ogt, %9, %198 : vector<1x256xf32>
    %cst_83 = arith.constant 0.000000e+00 : f32
    %200 = vector.shape_cast %199 : vector<1x256xi1> to vector<1x256xi1>
    %201 = vector.broadcast %200 : vector<1x256xi1> to vector<8x256xi1>
    %202 = vector.broadcast %cst_83 : f32 to vector<8x256xf32>
    %203 = arith.select %201, %197, %202 : vector<8x256xi1>, vector<8x256xf32>
    %c255_i32_84 = arith.constant 255 : i32
    %204 = tpu.dynamic_rotate %169 by %c255_i32_84 dim 1 : vector<8x256xf32>, i32 -> vector<8x256xf32>
    %cst_85 = arith.constant 1.450000e+01 : f32
    %205 = vector.broadcast %cst_85 : f32 to vector<1x256xf32>
    %206 = arith.cmpf olt, %9, %205 : vector<1x256xf32>
    %cst_86 = arith.constant 0.000000e+00 : f32
    %207 = vector.shape_cast %206 : vector<1x256xi1> to vector<1x256xi1>
    %208 = vector.broadcast %207 : vector<1x256xi1> to vector<8x256xi1>
    %209 = vector.broadcast %cst_86 : f32 to vector<8x256xf32>
    %210 = arith.select %208, %204, %209 : vector<8x256xi1>, vector<8x256xf32>
    %c241_i32_87 = arith.constant 241 : i32
    %211 = tpu.dynamic_rotate %169 by %c241_i32_87 dim 1 : vector<8x256xf32>, i32 -> vector<8x256xf32>
    %cst_88 = arith.constant 1.450000e+01 : f32
    %212 = vector.broadcast %cst_88 : f32 to vector<1x256xf32>
    %213 = arith.cmpf olt, %6, %212 : vector<1x256xf32>
    %cst_89 = arith.constant 5.000000e-01 : f32
    %214 = vector.broadcast %cst_89 : f32 to vector<1x256xf32>
    %215 = arith.cmpf ogt, %9, %214 : vector<1x256xf32>
    %216 = arith.andi %213, %215 : vector<1x256xi1>
    %cst_90 = arith.constant 0.000000e+00 : f32
    %217 = vector.shape_cast %216 : vector<1x256xi1> to vector<1x256xi1>
    %218 = vector.broadcast %217 : vector<1x256xi1> to vector<8x256xi1>
    %219 = vector.broadcast %cst_90 : f32 to vector<8x256xf32>
    %220 = arith.select %218, %211, %219 : vector<8x256xi1>, vector<8x256xf32>
    %c240_i32_91 = arith.constant 240 : i32
    %221 = tpu.dynamic_rotate %169 by %c240_i32_91 dim 1 : vector<8x256xf32>, i32 -> vector<8x256xf32>
    %cst_92 = arith.constant 1.450000e+01 : f32
    %222 = vector.broadcast %cst_92 : f32 to vector<1x256xf32>
    %223 = arith.cmpf olt, %6, %222 : vector<1x256xf32>
    %cst_93 = arith.constant 0.000000e+00 : f32
    %224 = vector.shape_cast %223 : vector<1x256xi1> to vector<1x256xi1>
    %225 = vector.broadcast %224 : vector<1x256xi1> to vector<8x256xi1>
    %226 = vector.broadcast %cst_93 : f32 to vector<8x256xf32>
    %227 = arith.select %225, %221, %226 : vector<8x256xi1>, vector<8x256xf32>
    %c239_i32_94 = arith.constant 239 : i32
    %228 = tpu.dynamic_rotate %169 by %c239_i32_94 dim 1 : vector<8x256xf32>, i32 -> vector<8x256xf32>
    %cst_95 = arith.constant 1.450000e+01 : f32
    %229 = vector.broadcast %cst_95 : f32 to vector<1x256xf32>
    %230 = arith.cmpf olt, %6, %229 : vector<1x256xf32>
    %cst_96 = arith.constant 1.450000e+01 : f32
    %231 = vector.broadcast %cst_96 : f32 to vector<1x256xf32>
    %232 = arith.cmpf olt, %9, %231 : vector<1x256xf32>
    %233 = arith.andi %230, %232 : vector<1x256xi1>
    %cst_97 = arith.constant 0.000000e+00 : f32
    %234 = vector.shape_cast %233 : vector<1x256xi1> to vector<1x256xi1>
    %235 = vector.broadcast %234 : vector<1x256xi1> to vector<8x256xi1>
    %236 = vector.broadcast %cst_97 : f32 to vector<8x256xf32>
    %237 = arith.select %235, %228, %236 : vector<8x256xi1>, vector<8x256xf32>
    %238 = tpu.concatenate %179, %186, %196, %203, %169, %210, %220, %227, %237 in 0 : vector<8x256xf32>, vector<8x256xf32>, vector<8x256xf32>, vector<8x256xf32>, vector<8x256xf32>, vector<8x256xf32>, vector<8x256xf32>, vector<8x256xf32>, vector<8x256xf32> -> vector<72x256xf32>
    %239 = arith.truncf %238 : vector<72x256xf32> to vector<72x256xbf16>
    %c0_98 = arith.constant 0 : index
    %c0_99 = arith.constant 0 : index
    %240 = vector.load %arg9[%c0_98, %c0_99] : memref<8x72xbf16, #tpu.memory_space<vmem>>, vector<8x72xbf16>
    %cst_100 = arith.constant dense<0.000000e+00> : vector<8x256xf32>
    %241 = tpu.matmul %240, %239, %cst_100 {dimension_numbers = #tpu.dot_dimension_numbers<[1], [0], [0], [1], [0, 0, 1, 1], [], []>} : vector<8x72xbf16>, vector<72x256xbf16>, vector<8x256xf32> -> vector<8x256xf32>
    %c0_101 = arith.constant 0 : index
    %c0_102 = arith.constant 0 : index
    %242 = vector.load %arg10[%c0_101, %c0_102] : memref<8x1xf32, #tpu.memory_space<vmem>>, vector<8x1xf32>
    %243 = vector.broadcast %242 : vector<8x1xf32> to vector<8x256xf32>
    %244 = arith.addf %241, %243 : vector<8x256xf32>
    %c0_103 = arith.constant 0 : index
    %c0_104 = arith.constant 0 : index
    %245 = vector.load %arg11[%c0_103, %c0_104] : memref<8x1xf32, #tpu.memory_space<vmem>>, vector<8x1xf32>
    %c0_105 = arith.constant 0 : index
    %c0_106 = arith.constant 0 : index
    %246 = vector.load %arg12[%c0_105, %c0_106] : memref<8x1xf32, #tpu.memory_space<vmem>>, vector<8x1xf32>
    %cst_107 = arith.constant dense<0.000000e+00> : vector<8xf32>
    %247 = vector.multi_reduction <add>, %244, %cst_107 [1] : vector<8x256xf32> to vector<8xf32>
    %248 = vector.shape_cast %247 : vector<8xf32> to vector<8x1xf32>
    %249 = arith.mulf %244, %244 : vector<8x256xf32>
    %cst_108 = arith.constant dense<0.000000e+00> : vector<8xf32>
    %250 = vector.multi_reduction <add>, %249, %cst_108 [1] : vector<8x256xf32> to vector<8xf32>
    %251 = vector.shape_cast %250 : vector<8xf32> to vector<8x1xf32>
    %cst_109 = arith.constant dense<0.000000e+00> : vector<8x1xf32>
    %252 = tpu.matmul %10, %248, %cst_109 {dimension_numbers = #tpu.dot_dimension_numbers<[1], [0], [0], [1], [0, 0, 1, 1], [], []>} : vector<8x8xf32>, vector<8x1xf32>, vector<8x1xf32> -> vector<8x1xf32>
    %cst_110 = arith.constant 0.001953125 : f32
    %253 = vector.broadcast %cst_110 : f32 to vector<8x1xf32>
    %254 = arith.mulf %252, %253 : vector<8x1xf32>
    %cst_111 = arith.constant dense<0.000000e+00> : vector<8x1xf32>
    %255 = tpu.matmul %10, %251, %cst_111 {dimension_numbers = #tpu.dot_dimension_numbers<[1], [0], [0], [1], [0, 0, 1, 1], [], []>} : vector<8x8xf32>, vector<8x1xf32>, vector<8x1xf32> -> vector<8x1xf32>
    %cst_112 = arith.constant 0.001953125 : f32
    %256 = vector.broadcast %cst_112 : f32 to vector<8x1xf32>
    %257 = arith.mulf %255, %256 : vector<8x1xf32>
    %258 = arith.mulf %254, %254 : vector<8x1xf32>
    %259 = arith.subf %257, %258 : vector<8x1xf32>
    %cst_113 = arith.constant 0.000000e+00 : f32
    %260 = vector.broadcast %cst_113 : f32 to vector<8x1xf32>
    %261 = arith.maximumf %259, %260 : vector<8x1xf32>
    %262 = vector.broadcast %254 : vector<8x1xf32> to vector<8x256xf32>
    %263 = arith.subf %244, %262 : vector<8x256xf32>
    %cst_114 = arith.constant 9.99999974E-6 : f32
    %264 = vector.broadcast %cst_114 : f32 to vector<8x1xf32>
    %265 = arith.addf %261, %264 : vector<8x1xf32>
    %266 = math.rsqrt %265 : vector<8x1xf32>
    %267 = vector.broadcast %266 : vector<8x1xf32> to vector<8x256xf32>
    %268 = arith.mulf %263, %267 : vector<8x256xf32>
    %269 = vector.broadcast %245 : vector<8x1xf32> to vector<8x256xf32>
    %270 = arith.mulf %268, %269 : vector<8x256xf32>
    %271 = vector.broadcast %246 : vector<8x1xf32> to vector<8x256xf32>
    %272 = arith.addf %270, %271 : vector<8x256xf32>
    %273 = arith.negf %272 : vector<8x256xf32>
    %274 = math.exp %273 : vector<8x256xf32>
    %cst_115 = arith.constant 1.000000e+00 : f32
    %275 = vector.broadcast %cst_115 : f32 to vector<8x256xf32>
    %276 = arith.addf %275, %274 : vector<8x256xf32>
    %277 = arith.divf %275, %276 : vector<8x256xf32>
    %278 = arith.mulf %272, %277 : vector<8x256xf32>
    %c0_116 = arith.constant 0 : index
    %c0_117 = arith.constant 0 : index
    %279 = vector.load %arg14[%c0_116, %c0_117] : memref<8x4xbf16, #tpu.memory_space<vmem>>, vector<8x4xbf16>
    %280 = arith.truncf %12 : vector<4x256xf32> to vector<4x256xbf16>
    %cst_118 = arith.constant dense<0.000000e+00> : vector<8x256xf32>
    %281 = tpu.matmul %279, %280, %cst_118 {dimension_numbers = #tpu.dot_dimension_numbers<[1], [0], [0], [1], [0, 0, 1, 1], [], []>} : vector<8x4xbf16>, vector<4x256xbf16>, vector<8x256xf32> -> vector<8x256xf32>
    %c0_119 = arith.constant 0 : index
    %c0_120 = arith.constant 0 : index
    %282 = vector.load %arg15[%c0_119, %c0_120] : memref<8x1xf32, #tpu.memory_space<vmem>>, vector<8x1xf32>
    %283 = vector.broadcast %282 : vector<8x1xf32> to vector<8x256xf32>
    %284 = arith.addf %281, %283 : vector<8x256xf32>
    %285 = arith.addf %278, %284 : vector<8x256xf32>
    %c0_121 = arith.constant 0 : index
    %c0_122 = arith.constant 0 : index
    %c0_123 = arith.constant 0 : index
    %286 = vector.load %arg16[%c0_121, %c0_122, %c0_123] : memref<1x8x256xf32, #tpu.memory_space<vmem>>, vector<1x8x256xf32>
    %287 = vector.shape_cast %286 : vector<1x8x256xf32> to vector<8x256xf32>
    %288 = vector.shape_cast %285 : vector<8x256xf32> to vector<1x8x256xf32>
    tpu.vector_store %arg16[%c0_121, %c0_122, %c0_123], %288 {strides = array<i32>} : memref<1x8x256xf32, #tpu.memory_space<vmem>>, vector<1x8x256xf32>,
    return
  }
  func.func @transform_0(%arg0: i32) -> (i32, i32, i32) {
    %c0_i32 = arith.constant 0 : i32
    %c0_i32_0 = arith.constant 0 : i32
    %c0_i32_1 = arith.constant 0 : i32
    return %arg0, %c0_i32, %c0_i32_0 : i32, i32, i32
  }
  func.func @transform_1(%arg0: i32) -> (i32, i32, i32) {
    %c0_i32 = arith.constant 0 : i32
    %c0_i32_0 = arith.constant 0 : i32
    %c0_i32_1 = arith.constant 0 : i32
    return %arg0, %c0_i32, %c0_i32_0 : i32, i32, i32
  }
  func.func @transform_2(%arg0: i32) -> (i32, i32) {
    %c0_i32 = arith.constant 0 : i32
    %c0_i32_0 = arith.constant 0 : i32
    %c0_i32_1 = arith.constant 0 : i32
    return %c0_i32, %c0_i32_0 : i32, i32
  }
  func.func @transform_3(%arg0: i32) -> (i32, i32) {
    %c0_i32 = arith.constant 0 : i32
    %c0_i32_0 = arith.constant 0 : i32
    %c0_i32_1 = arith.constant 0 : i32
    return %c0_i32, %c0_i32_0 : i32, i32
  }
  func.func @transform_4(%arg0: i32) -> (i32, i32) {
    %c0_i32 = arith.constant 0 : i32
    %c0_i32_0 = arith.constant 0 : i32
    %c0_i32_1 = arith.constant 0 : i32
    return %c0_i32, %c0_i32_0 : i32, i32
  }
  func.func @transform_5(%arg0: i32) -> (i32, i32) {
    %c0_i32 = arith.constant 0 : i32
    %c0_i32_0 = arith.constant 0 : i32
    %c0_i32_1 = arith.constant 0 : i32
    return %c0_i32, %c0_i32_0 : i32, i32
  }
  func.func @transform_6(%arg0: i32) -> (i32, i32) {
    %c0_i32 = arith.constant 0 : i32
    %c0_i32_0 = arith.constant 0 : i32
    %c0_i32_1 = arith.constant 0 : i32
    return %c0_i32, %c0_i32_0 : i32, i32
  }
  func.func @transform_7(%arg0: i32) -> (i32, i32) {
    %c0_i32 = arith.constant 0 : i32
    %c0_i32_0 = arith.constant 0 : i32
    %c0_i32_1 = arith.constant 0 : i32
    return %c0_i32, %c0_i32_0 : i32, i32
  }
  func.func @transform_8(%arg0: i32) -> (i32, i32) {
    %c0_i32 = arith.constant 0 : i32
    %c0_i32_0 = arith.constant 0 : i32
    %c0_i32_1 = arith.constant 0 : i32
    return %c0_i32, %c0_i32_0 : i32, i32
  }
  func.func @transform_9(%arg0: i32) -> (i32, i32) {
    %c0_i32 = arith.constant 0 : i32
    %c0_i32_0 = arith.constant 0 : i32
    %c0_i32_1 = arith.constant 0 : i32
    return %c0_i32, %c0_i32_0 : i32, i32
  }
  func.func @transform_10(%arg0: i32) -> (i32, i32) {
    %c0_i32 = arith.constant 0 : i32
    %c0_i32_0 = arith.constant 0 : i32
    %c0_i32_1 = arith.constant 0 : i32
    return %c0_i32, %c0_i32_0 : i32, i32
  }
  func.func @transform_11(%arg0: i32) -> (i32, i32) {
    %c0_i32 = arith.constant 0 : i32
    %c0_i32_0 = arith.constant 0 : i32
    %c0_i32_1 = arith.constant 0 : i32
    return %c0_i32, %c0_i32_0 : i32, i32
  }
  func.func @transform_12(%arg0: i32) -> (i32, i32) {
    %c0_i32 = arith.constant 0 : i32
    %c0_i32_0 = arith.constant 0 : i32
    %c0_i32_1 = arith.constant 0 : i32
    return %c0_i32, %c0_i32_0 : i32, i32
  }
  func.func @transform_13(%arg0: i32) -> (i32, i32) {
    %c0_i32 = arith.constant 0 : i32
    %c0_i32_0 = arith.constant 0 : i32
    %c0_i32_1 = arith.constant 0 : i32
    return %c0_i32, %c0_i32_0 : i32, i32
  }
  func.func @transform_14(%arg0: i32) -> (i32, i32) {
    %c0_i32 = arith.constant 0 : i32
    %c0_i32_0 = arith.constant 0 : i32
    %c0_i32_1 = arith.constant 0 : i32
    return %c0_i32, %c0_i32_0 : i32, i32
  }
  func.func @transform_15(%arg0: i32) -> (i32, i32, i32) {
    %c0_i32 = arith.constant 0 : i32
    %c0_i32_0 = arith.constant 0 : i32
    %c0_i32_1 = arith.constant 0 : i32
    return %arg0, %c0_i32, %c0_i32_0 : i32, i32, i32
  }
}

</mosaic_0001>

<bundles_post_ra>
// kernel: resnet_block_forward.1
= control target key start
LH: loop header
LB: loop body
LE: loop exit
PB: predicated region body
PF: predicated region fallthrough
CT: control target
= control target key end

     0   :  { %s4226_s0 = inlined_call_operand.hbm [shape: f32[2,4,256], index: 0, kind: input, shape index: {}]   ;;  %s4227_s1 = inlined_call_operand.hbm [shape: f32[2,16,1], index: 1, kind: input, shape index: {}]   ;;  %s4228_s2 = inlined_call_operand.hbm [shape: bf16[8,36], index: 2, kind: input, shape index: {}]   ;;  %s4229_s3 = inlined_call_operand.hbm [shape: f32[8,1], index: 3, kind: input, shape index: {}]   ;;  %s4230_s4 = inlined_call_operand.hbm [shape: f32[8,1], index: 4, kind: input, shape index: {}]   ;;  %s4231_s5 = inlined_call_operand.hbm [shape: f32[8,1], index: 5, kind: input, shape index: {}]   ;;  %s4232_s6 = inlined_call_operand.hbm [shape: bf16[8,16], index: 6, kind: input, shape index: {}]   ;;  %s4233_s7 = inlined_call_operand.hbm [shape: f32[8,1], index: 7, kind: input, shape index: {}]   ;;  %s4234_s8 = inlined_call_operand.hbm [shape: bf16[8,72], index: 8, kind: input, shape index: {}]   ;;  %s4235_s9 = inlined_call_operand.hbm [shape: f32[8,1], index: 9, kind: input, shape index: {}]   ;;  %s4236_s10 = inlined_call_operand.hbm [shape: f32[8,1], index: 10, kind: input, shape index: {}]   ;;  %s4237_s11 = inlined_call_operand.hbm [shape: f32[8,1], index: 11, kind: input, shape index: {}]   ;;  %s4238_s12 = inlined_call_operand.hbm [shape: f32[8,8], index: 12, kind: input, shape index: {}]   ;;  %s4239_s13 = inlined_call_operand.hbm [shape: bf16[8,4], index: 13, kind: input, shape index: {}]   ;;  %s4240_s14 = inlined_call_operand.hbm [shape: f32[8,1], index: 14, kind: input, shape index: {}]   ;;  %s4241_s15 = inlined_call_operand.hbm [shape: f32[2,8,256], index: 15, kind: output, shape index: {}]  }
   0x1   :  { %4271 = sst [smem:[#allocation40_spill]] %s4226_s0 }
   0x2   :  { %4272 = sst [smem:[#allocation41_spill]] %s4227_s1 }
   0x3   :  { %4273 = sst [smem:[#allocation42_spill]] %s4228_s2 }
   0x4   :  { %4274 = sst [smem:[#allocation43_spill]] %s4229_s3 }
   0x5   :  { %4275 = sst [smem:[#allocation44_spill]] %s4230_s4 }
   0x6   :  { %4276 = sst [smem:[#allocation45_spill]] %s4231_s5 }
   0x7   :  { %4277 = sst [smem:[#allocation46_spill]] %s4232_s6 }
   0x8   :  { %4278 = sst [smem:[#allocation47_spill]] %s4233_s7 }
   0x9   :  { %4279 = sst [smem:[#allocation48_spill]] %s4234_s8 }
   0xa   :  { %4280 = sst [smem:[#allocation49_spill]] %s4241_s15 }
   0xb   :  { %20 = vsyncpa [#allocation3], 0 }
   0xc   :  { %22 = vsyncpa [#allocation3 + $0x1], 0 }
   0xd   :  { %23 = vsyncpa [#allocation6], 0 }
   0xe   :  { %25 = vsyncpa [#allocation6 + $0x1], 0 }
   0xf   :  { %26 = vsyncpa [#allocation9], 0 }
  0x10   :  { %27 = vsyncpa [#allocation12], 0 }
  0x11   :  { %28 = vsyncpa [#allocation15], 0 }
  0x12   :  { %29 = vsyncpa [#allocation18], 0 }
  0x13   :  { %30 = vsyncpa [#allocation21], 0 }
  0x14   :  { %31 = vsyncpa [#allocation24], 0 }
  0x15   :  { %32 = vsyncpa [#allocation4], 0 }
  0x16   :  { %34 = vsyncpa [#allocation4 + $0x1], 0  ;;  %s3360_s18 = smov 0   ;;  %s3362_s19 = smov 0  }
  0x17   :  { %s3364_s20 = smov 0   ;;  %s3366_s21 = smov 0  }
  0x18 LB: > { %4281 = sst [smem:[#allocation37_spill]] %s3229_s18  ;;  %s3243_s22 = smov [#allocation7]   ;;  %s3241_s21 = sphi %s3366_s21, %s4372_s21   ;;  %s3237_s20 = sphi %s3364_s20, %s4371_s20   ;;  %s3233_s19 = sphi %s3362_s19, %s4370_s19   ;;  %s3229_s18 = sphi %s3360_s18, %s4369_s18  }
  0x19   : > { %s409_s23 = sshll.u32 %s3243_s22, 4  ;;  %s3381_s24 = sadd.s32 4294967295, %s3241_s21   ;;  %s3386_s23 = int_to_ptr.vmem [resolvable:$true] %s409_s23 }
  0x1a   : > { %4282 = sst [smem:[#allocation38_spill]] %s3381_s24  ;;  %p2262_p0 = scmp.ge.s32.totalorder %s3241_s21, 1 }
  0x1b   : > { %p4249_p1 = scmp.eq.s32.totalorder %s3381_s24, 0  ;;  %p396_p2 = scmp.lt.s32.totalorder %s3241_s21, 3 }
  0x1c   : > { %s3244_s26 = smov [#allocation8]   ;;  %s3245_s28 = smov [#allocation11]  }
  0x1d   : > { %p3388_p3 = pnand %p2262_p0, %p396_p2  ;;  %s420_s27 = sshll.u32 %s3244_s26, 4  ;;  %s3395_s27 = int_to_ptr.vmem [resolvable:$true] %s420_s27 }
  0x1e   : > { %s442_s29 = sshll.u32 %s3245_s28, 4  ;;  %s3246_s16 = smov [#allocation14]   ;;  %s3403_s29 = int_to_ptr.vmem [resolvable:$true] %s442_s29 }
  0x1f   : > { %s4283_s25 = scalar_select %p3388_p3, 1, 0 }
  0x20   : > { %p2461_p5 = pneg %p3388_p3  ;;  %s3405_s17 = sshll.u32 %s3246_s16, 4  ;;  %s465_s17 = int_to_ptr.vmem [resolvable:$true] %s3405_s17 }
  0x21   : > { %4284 = sst [smem:[#allocation39_spill]] %s4283_s25  ;;  %s4286_s2 = sld [smem:[#allocation42_spill]] }
  0x22   : > { %p3399_p6 = pnand %p2461_p5, %p4249_p1 }
  0x24   : > { %p3415_p8 = pneg %p3399_p6 }
  0x27   : > { %s2719_s25 = scalar_lea.hbm %s4286_s2, 64 }
  0x28   : > { %p2720_p7 = scmp.ne.s32.totalorder %s4286_s2, %s2719_s25  ;;  %p2726_p11 = scmp.lt.u32.totalorder %s2719_s25, %s4286_s2 }
  0x2a   : > { %p2722_p9 = pnand %p3415_p8, %p2720_p7 }
  0x2c   : > { %p2723_p10 = pneg %p2722_p9 }
  0x2e   : > { %p2728_p12 = pnand %p2726_p11, %p2723_p10 }
  0x30   : > { %2731 = shalt.err (!%p2728_p12)
}
  0x31   : > { %s2732_s1 = scalar_lea.vmem %s3386_s23, 64  ;;  %p2740_p5 = scmp.lt.s32.totalorder %s3386_s23, %s3386_s23 }
  0x32   : > { %p2733_p13 = scmp.ne.s32.totalorder %s3386_s23, %s2732_s1  ;;  %p2741_p4 = scmp.lt.s32.totalorder %s2732_s1, %s2732_s1 }
  0x34   : > { %p2735_p0 = pnand %p2733_p13, %p3415_p8  ;;  %p2742_p7 = por %p2741_p4, %p2740_p5 }
  0x36   : > { %p2736_p2 = pneg %p2735_p0 }
  0x38   : > { %p2743_p9 = pnand %p2742_p7, %p2736_p2 }
  0x3a   : > { %2746 = shalt.err (!%p2743_p9)
}
  0x3b   : > { %2464 = dma.hbm_to_vmem [thread:$0]  (!%p3399_p6), %s4286_s2, 64, %s3386_s23, [#allocation6]  }
  0x3c   : > { %s4288_s3 = sld [smem:[#allocation43_spill]] }
  0x42   : > { %s2747_s26 = scalar_lea.hbm %s4288_s3, 128 }
  0x43   : > { %p2748_p10 = scmp.ne.s32.totalorder %s4288_s3, %s2747_s26  ;;  %p2754_p12 = scmp.lt.u32.totalorder %s2747_s26, %s4288_s3 }
  0x45   : > { %p2750_p4 = pnand %p2748_p10, %p3415_p8 }
  0x47   : > { %p2751_p11 = pneg %p2750_p4 }
  0x49   : > { %p2756_p13 = pnand %p2754_p12, %p2751_p11 }
  0x4b   : > { %2759 = shalt.err (!%p2756_p13)
}
  0x4c   : > { %s2760_s23 = scalar_lea.vmem %s3395_s27, 128  ;;  %p2768_p7 = scmp.lt.s32.totalorder %s3395_s27, %s3395_s27 }
  0x4d   : > { %p2761_p0 = scmp.ne.s32.totalorder %s3395_s27, %s2760_s23  ;;  %p2769_p9 = scmp.lt.s32.totalorder %s2760_s23, %s2760_s23 }
  0x4f   : > { %p2763_p2 = pnand %p2761_p0, %p3415_p8  ;;  %p2770_p10 = por %p2769_p9, %p2768_p7 }
  0x51   : > { %p2764_p5 = pneg %p2763_p2 }
  0x53   : > { %p2771_p4 = pnand %p2770_p10, %p2764_p5 }
  0x55   : > { %2774 = shalt.err (!%p2771_p4)
}
  0x56   : > { %2467 = dma.hbm_to_vmem [thread:$0]  (!%p3399_p6), %s4288_s3, 128, %s3395_s27, [#allocation9]  }
  0x57   : > { %s4289_s5 = sld [smem:[#allocation45_spill]] }
  0x5d   : > { %s2775_s25 = scalar_lea.hbm %s4289_s5, 128 }
  0x5e   : > { %p2776_p11 = scmp.ne.s32.totalorder %s4289_s5, %s2775_s25  ;;  %p2782_p0 = scmp.lt.u32.totalorder %s2775_s25, %s4289_s5 }
  0x60   : > { %p2778_p12 = pnand %p2776_p11, %p3415_p8 }
  0x62   : > { %p2779_p13 = pneg %p2778_p12 }
  0x64   : > { %p2784_p2 = pnand %p2782_p0, %p2779_p13 }
  0x66   : > { %2787 = shalt.err (!%p2784_p2)
}
  0x67   : > { %s2788_s27 = scalar_lea.vmem %s3403_s29, 128  ;;  %p2796_p10 = scmp.lt.s32.totalorder %s3403_s29, %s3403_s29 }
  0x68   : > { %p2789_p5 = scmp.ne.s32.totalorder %s3403_s29, %s2788_s27  ;;  %p2797_p4 = scmp.lt.s32.totalorder %s2788_s27, %s2788_s27 }
  0x6a   : > { %p2791_p7 = pnand %p2789_p5, %p3415_p8  ;;  %p2798_p11 = por %p2797_p4, %p2796_p10 }
  0x6c   : > { %p2792_p9 = pneg %p2791_p7 }
  0x6e   : > { %p2799_p12 = pnand %p2798_p11, %p2792_p9 }
  0x70   : > { %2802 = shalt.err (!%p2799_p12)
}
  0x71   : > { %2473 = dma.hbm_to_vmem [thread:$0]  (!%p3399_p6), %s4289_s5, 128, %s3403_s29, [#allocation12]  }
  0x72   : > { %s3247_s24 = smov [#allocation17]   ;;  %s4290_s7 = sld [smem:[#allocation47_spill]] }
  0x73   : > { %s486_s0 = sshll.u32 %s3247_s24, 4  ;;  %s487_s0 = int_to_ptr.vmem [resolvable:$true] %s486_s0 }
  0x78   : > { %s2803_s22 = scalar_lea.hbm %s4290_s7, 128 }
  0x79   : > { %p2804_p13 = scmp.ne.s32.totalorder %s4290_s7, %s2803_s22  ;;  %p2810_p5 = scmp.lt.u32.totalorder %s2803_s22, %s4290_s7 }
  0x7b   : > { %p2806_p0 = pnand %p2804_p13, %p3415_p8 }
  0x7d   : > { %p2807_p2 = pneg %p2806_p0 }
  0x7f   : > { %p2812_p7 = pnand %p2810_p5, %p2807_p2 }
  0x81   : > { %2815 = shalt.err (!%p2812_p7)
}
  0x82   : > { %s2816_s29 = scalar_lea.vmem %s465_s17, 128  ;;  %p2824_p11 = scmp.lt.s32.totalorder %s465_s17, %s465_s17 }
  0x83   : > { %p2817_p9 = scmp.ne.s32.totalorder %s465_s17, %s2816_s29  ;;  %p2825_p12 = scmp.lt.s32.totalorder %s2816_s29, %s2816_s29 }
  0x85   : > { %p2819_p10 = pnand %p2817_p9, %p3415_p8  ;;  %p2826_p1 = por %p2825_p12, %p2824_p11 }
  0x87   : > { %p2820_p4 = pneg %p2819_p10 }
  0x89   : > { %p2827_p3 = pnand %p2826_p1, %p2820_p4 }
  0x8b   : > { %2830 = shalt.err (!%p2827_p3)
}
  0x8c   : > { %2479 = dma.hbm_to_vmem [thread:$0]  (!%p3399_p6), %s4290_s7, 128, %s465_s17, [#allocation15]  }
  0x8d   : > { %s2831_s25 = scalar_lea.hbm %s4235_s9, 128 }
  0x8e   : > { %p2832_p13 = scmp.ne.s32.totalorder %s4235_s9, %s2831_s25  ;;  %p2838_p3 = scmp.lt.u32.totalorder %s2831_s25, %s4235_s9 }
  0x90   : > { %p2834_p0 = pnand %p2832_p13, %p3415_p8 }
  0x92   : > { %p2835_p1 = pneg %p2834_p0 }
  0x94   : > { %p2840_p2 = pnand %p2838_p3, %p2835_p1 }
  0x96   : > { %2843 = shalt.err (!%p2840_p2)
}
  0x97   : > { %s2844_s27 = scalar_lea.vmem %s487_s0, 128  ;;  %p2852_p10 = scmp.lt.s32.totalorder %s487_s0, %s487_s0 }
  0x98   : > { %p2845_p5 = scmp.ne.s32.totalorder %s487_s0, %s2844_s27  ;;  %p2853_p4 = scmp.lt.s32.totalorder %s2844_s27, %s2844_s27 }
  0x9a   : > { %p2847_p7 = pnand %p2845_p5, %p3415_p8  ;;  %p2854_p11 = por %p2853_p4, %p2852_p10 }
  0x9c   : > { %p2848_p9 = pneg %p2847_p7 }
  0x9e   : > { %p2855_p12 = pnand %p2854_p11, %p2848_p9 }
  0xa0   : > { %2858 = shalt.err (!%p2855_p12)
}
  0xa1   : > { %2485 = dma.hbm_to_vmem [thread:$0]  (!%p3399_p6), %s4235_s9, 128, %s487_s0, [#allocation18]  }
  0xa2   : > { %s3248_s23 = smov [#allocation20]   ;;  %s3249_s24 = smov [#allocation23]  }
  0xa3   : > { %s508_s18 = sshll.u32 %s3248_s23, 4  ;;  %s530_s15 = sshll.u32 %s3249_s24, 4  ;;  %s509_s18 = int_to_ptr.vmem [resolvable:$true] %s508_s18  ;;  %s531_s15 = int_to_ptr.vmem [resolvable:$true] %s530_s15 }
  0xa4   : > { %s2859_s26 = scalar_lea.hbm %s4237_s11, 128 }
  0xa5   : > { %p2860_p13 = scmp.ne.s32.totalorder %s4237_s11, %s2859_s26  ;;  %p2866_p3 = scmp.lt.u32.totalorder %s2859_s26, %s4237_s11 }
  0xa7   : > { %p2862_p0 = pnand %p2860_p13, %p3415_p8 }
  0xa9   : > { %p2863_p1 = pneg %p2862_p0 }
  0xab   : > { %p2868_p2 = pnand %p2866_p3, %p2863_p1 }
  0xad   : > { %2871 = shalt.err (!%p2868_p2)
}
  0xae   : > { %s2872_s0 = scalar_lea.vmem %s509_s18, 128  ;;  %p2880_p10 = scmp.lt.s32.totalorder %s509_s18, %s509_s18 }
  0xaf   : > { %p2873_p5 = scmp.ne.s32.totalorder %s509_s18, %s2872_s0  ;;  %p2881_p4 = scmp.lt.s32.totalorder %s2872_s0, %s2872_s0 }
  0xb1   : > { %p2875_p7 = pnand %p2873_p5, %p3415_p8  ;;  %p2882_p11 = por %p2881_p4, %p2880_p10 }
  0xb3   : > { %p2876_p9 = pneg %p2875_p7 }
  0xb5   : > { %p2883_p12 = pnand %p2882_p11, %p2876_p9 }
  0xb7   : > { %2886 = shalt.err (!%p2883_p12)
}
  0xb8   : > { %2491 = dma.hbm_to_vmem [thread:$0]  (!%p3399_p6), %s4237_s11, 128, %s509_s18, [#allocation21]  }
  0xb9   : > { %s2887_s22 = scalar_lea.hbm %s4239_s13, 64 }
  0xba   : > { %p2888_p13 = scmp.ne.s32.totalorder %s4239_s13, %s2887_s22  ;;  %p2894_p3 = scmp.lt.u32.totalorder %s2887_s22, %s4239_s13 }
  0xbc   : > { %p2890_p0 = pnand %p2888_p13, %p3415_p8 }
  0xbe   : > { %p2891_p1 = pneg %p2890_p0 }
  0xc0   : > { %p2896_p2 = pnand %p2894_p3, %p2891_p1 }
  0xc2   : > { %2899 = shalt.err (!%p2896_p2)
}
  0xc3   : > { %s2900_s17 = scalar_lea.vmem %s531_s15, 64  ;;  %p2908_p10 = scmp.lt.s32.totalorder %s531_s15, %s531_s15 }
  0xc4   : > { %p2901_p5 = scmp.ne.s32.totalorder %s531_s15, %s2900_s17  ;;  %p2909_p4 = scmp.lt.s32.totalorder %s2900_s17, %s2900_s17 }
  0xc6   : > { %p2903_p7 = pnand %p2901_p5, %p3415_p8  ;;  %p2910_p11 = por %p2909_p4, %p2908_p10 }
  0xc8   : > { %p2904_p9 = pneg %p2903_p7 }
  0xca   : > { %p2911_p12 = pnand %p2910_p11, %p2904_p9 }
  0xcc   : > { %2914 = shalt.err (!%p2911_p12)
}
  0xcd   : > { %2497 = dma.hbm_to_vmem [thread:$0]  (!%p3399_p6), %s4239_s13, 64, %s531_s15, [#allocation24]  }
  0xce   : > { %s3250_s29 = smov [#allocation10]   ;;  %s3251_s24 = smov [#allocation13]  }
  0xcf   : > { %s431_s23 = sshll.u32 %s3250_s29, 4  ;;  %s453_s25 = sshll.u32 %s3251_s24, 4  ;;  %s432_s23 = int_to_ptr.vmem [resolvable:$true] %s431_s23  ;;  %s454_s25 = int_to_ptr.vmem [resolvable:$true] %s453_s25 }
  0xd0   : > { %s4291_s4 = sld [smem:[#allocation44_spill]] }
  0xd6   : > { %s2915_s16 = scalar_lea.hbm %s4291_s4, 128 }
  0xd7   : > { %p2916_p13 = scmp.ne.s32.totalorder %s4291_s4, %s2915_s16  ;;  %p2922_p3 = scmp.lt.u32.totalorder %s2915_s16, %s4291_s4 }
  0xd9   : > { %p2918_p0 = pnand %p2916_p13, %p3415_p8 }
  0xdb   : > { %p2919_p1 = pneg %p2918_p0 }
  0xdd   : > { %p2924_p2 = pnand %p2922_p3, %p2919_p1 }
  0xdf   : > { %2927 = shalt.err (!%p2924_p2)
}
  0xe0   : > { %s2928_s15 = scalar_lea.vmem %s432_s23, 128  ;;  %p2936_p10 = scmp.lt.s32.totalorder %s432_s23, %s432_s23 }
  0xe1   : > { %p2929_p5 = scmp.ne.s32.totalorder %s432_s23, %s2928_s15  ;;  %p2937_p4 = scmp.lt.s32.totalorder %s2928_s15, %s2928_s15 }
  0xe3   : > { %p2931_p7 = pnand %p2929_p5, %p3415_p8  ;;  %p2938_p11 = por %p2937_p4, %p2936_p10 }
  0xe5   : > { %p2932_p9 = pneg %p2931_p7 }
  0xe7   : > { %p2939_p12 = pnand %p2938_p11, %p2932_p9 }
  0xe9   : > { %2942 = shalt.err (!%p2939_p12)
}
  0xea   : > { %2470 = dma.hbm_to_vmem [thread:$0]  (!%p3399_p6), %s4291_s4, 128, %s432_s23, [#allocation9]  }
  0xeb   : > { %s4292_s6 = sld [smem:[#allocation46_spill]] }
  0xf1   : > { %s2943_s26 = scalar_lea.hbm %s4292_s6, 64 }
  0xf2   : > { %p2944_p13 = scmp.ne.s32.totalorder %s4292_s6, %s2943_s26  ;;  %p2950_p3 = scmp.lt.u32.totalorder %s2943_s26, %s4292_s6 }
  0xf4   : > { %p2946_p0 = pnand %p2944_p13, %p3415_p8 }
  0xf6   : > { %p2947_p1 = pneg %p2946_p0 }
  0xf8   : > { %p2952_p2 = pnand %p2950_p3, %p2947_p1 }
  0xfa   : > { %2955 = shalt.err (!%p2952_p2)
}
  0xfb   : > { %s2956_s18 = scalar_lea.vmem %s454_s25, 64  ;;  %p2964_p10 = scmp.lt.s32.totalorder %s454_s25, %s454_s25 }
  0xfc   : > { %p2957_p5 = scmp.ne.s32.totalorder %s454_s25, %s2956_s18  ;;  %p2965_p4 = scmp.lt.s32.totalorder %s2956_s18, %s2956_s18 }
  0xfe   : > { %p2959_p7 = pnand %p2957_p5, %p3415_p8  ;;  %p2966_p11 = por %p2965_p4, %p2964_p10 }
 0x100   : > { %p2960_p9 = pneg %p2959_p7 }
 0x102   : > { %p2967_p12 = pnand %p2966_p11, %p2960_p9 }
 0x104   : > { %2970 = shalt.err (!%p2967_p12)
}
 0x105   : > { %2476 = dma.hbm_to_vmem [thread:$0]  (!%p3399_p6), %s4292_s6, 64, %s454_s25, [#allocation12]  }
 0x106   : > { %s3252_s0 = smov [#allocation16]   ;;  %s3253_s24 = smov [#allocation19]  }
 0x107   : > { %s475_s29 = sshll.u32 %s3252_s0, 4  ;;  %s497_s22 = sshll.u32 %s3253_s24, 4  ;;  %s476_s29 = int_to_ptr.vmem [resolvable:$true] %s475_s29  ;;  %s498_s22 = int_to_ptr.vmem [resolvable:$true] %s497_s22 }
 0x108   : > { %s4293_s8 = sld [smem:[#allocation48_spill]] }
 0x10e   : > { %s2971_s1 = scalar_lea.hbm %s4293_s8, 64 }
 0x10f   : > { %p2972_p13 = scmp.ne.s32.totalorder %s4293_s8, %s2971_s1  ;;  %p2978_p3 = scmp.lt.u32.totalorder %s2971_s1, %s4293_s8 }
 0x111   : > { %p2974_p0 = pnand %p2972_p13, %p3415_p8 }
 0x113   : > { %p2975_p1 = pneg %p2974_p0 }
 0x115   : > { %p2980_p2 = pnand %p2978_p3, %p2975_p1 }
 0x117   : > { %2983 = shalt.err (!%p2980_p2)
}
 0x118   : > { %s2984_s25 = scalar_lea.vmem %s476_s29, 64  ;;  %p2992_p10 = scmp.lt.s32.totalorder %s476_s29, %s476_s29 }
 0x119   : > { %p2985_p5 = scmp.ne.s32.totalorder %s476_s29, %s2984_s25  ;;  %p2993_p4 = scmp.lt.s32.totalorder %s2984_s25, %s2984_s25 }
 0x11b   : > { %p2987_p7 = pnand %p2985_p5, %p3415_p8  ;;  %p2994_p11 = por %p2993_p4, %p2992_p10 }
 0x11d   : > { %p2988_p9 = pneg %p2987_p7 }
 0x11f   : > { %p2995_p12 = pnand %p2994_p11, %p2988_p9 }
 0x121   : > { %2998 = shalt.err (!%p2995_p12)
}
 0x122   : > { %2482 = dma.hbm_to_vmem [thread:$0]  (!%p3399_p6), %s4293_s8, 64, %s476_s29, [#allocation15]  }
 0x123   : > { %s2999_s16 = scalar_lea.hbm %s4236_s10, 128 }
 0x124   : > { %p3000_p13 = scmp.ne.s32.totalorder %s4236_s10, %s2999_s16  ;;  %p3006_p3 = scmp.lt.u32.totalorder %s2999_s16, %s4236_s10 }
 0x126   : > { %p3002_p0 = pnand %p3000_p13, %p3415_p8 }
 0x128   : > { %p3003_p1 = pneg %p3002_p0 }
 0x12a   : > { %p3008_p2 = pnand %p3006_p3, %p3003_p1 }
 0x12c   : > { %3011 = shalt.err (!%p3008_p2)
}
 0x12d   : > { %s3012_s23 = scalar_lea.vmem %s498_s22, 128  ;;  %p3020_p10 = scmp.lt.s32.totalorder %s498_s22, %s498_s22 }
 0x12e   : > { %p3013_p5 = scmp.ne.s32.totalorder %s498_s22, %s3012_s23  ;;  %p3021_p4 = scmp.lt.s32.totalorder %s3012_s23, %s3012_s23 }
 0x130   : > { %p3015_p7 = pnand %p3013_p5, %p3415_p8  ;;  %p3022_p11 = por %p3021_p4, %p3020_p10 }
 0x132   : > { %p3016_p9 = pneg %p3015_p7 }
 0x134   : > { %p3023_p12 = pnand %p3022_p11, %p3016_p9 }
 0x136   : > { %3026 = shalt.err (!%p3023_p12)
}
 0x137   : > { %2488 = dma.hbm_to_vmem [thread:$0]  (!%p3399_p6), %s4236_s10, 128, %s498_s22, [#allocation18]  }
 0x138   : > { %s3254_s15 = smov [#allocation22]   ;;  %s3255_s24 = smov [#allocation25]  }
 0x139   : > { %s519_s0 = sshll.u32 %s3254_s15, 4  ;;  %s541_s26 = sshll.u32 %s3255_s24, 4  ;;  %s520_s0 = int_to_ptr.vmem [resolvable:$true] %s519_s0  ;;  %s542_s26 = int_to_ptr.vmem [resolvable:$true] %s541_s26 }
 0x13a   : > { %s3027_s27 = scalar_lea.hbm %s4238_s12, 128 }
 0x13b   : > { %p3028_p13 = scmp.ne.s32.totalorder %s4238_s12, %s3027_s27  ;;  %p3034_p3 = scmp.lt.u32.totalorder %s3027_s27, %s4238_s12 }
 0x13d   : > { %p3030_p0 = pnand %p3028_p13, %p3415_p8 }
 0x13f   : > { %p3031_p1 = pneg %p3030_p0 }
 0x141   : > { %p3036_p2 = pnand %p3034_p3, %p3031_p1 }
 0x143   : > { %3039 = shalt.err (!%p3036_p2)
}
 0x144   : > { %s3040_s22 = scalar_lea.vmem %s520_s0, 128  ;;  %p3048_p10 = scmp.lt.s32.totalorder %s520_s0, %s520_s0 }
 0x145   : > { %p3041_p5 = scmp.ne.s32.totalorder %s520_s0, %s3040_s22  ;;  %p3049_p4 = scmp.lt.s32.totalorder %s3040_s22, %s3040_s22 }
 0x147   : > { %p3043_p7 = pnand %p3041_p5, %p3415_p8  ;;  %p3050_p11 = por %p3049_p4, %p3048_p10 }
 0x149   : > { %p3044_p9 = pneg %p3043_p7 }
 0x14b   : > { %p3051_p12 = pnand %p3050_p11, %p3044_p9 }
 0x14d   : > { %3054 = shalt.err (!%p3051_p12)
}
 0x14e   : > { %2494 = dma.hbm_to_vmem [thread:$0]  (!%p3399_p6), %s4238_s12, 128, %s520_s0, [#allocation21]  }
 0x14f   : > { %s3055_s1 = scalar_lea.hbm %s4240_s14, 128 }
 0x150   : > { %p3056_p13 = scmp.ne.s32.totalorder %s4240_s14, %s3055_s1  ;;  %p3062_p3 = scmp.lt.u32.totalorder %s3055_s1, %s4240_s14 }
 0x152   : > { %p3058_p0 = pnand %p3056_p13, %p3415_p8 }
 0x154   : > { %p3059_p1 = pneg %p3058_p0 }
 0x156   : > { %p3064_p2 = pnand %p3062_p3, %p3059_p1 }
 0x158   : > { %3067 = shalt.err (!%p3064_p2)
}
 0x159   : > { %s3068_s29 = scalar_lea.vmem %s542_s26, 128  ;;  %p3076_p10 = scmp.lt.s32.totalorder %s542_s26, %s542_s26 }
 0x15a   : > { %p3069_p5 = scmp.ne.s32.totalorder %s542_s26, %s3068_s29  ;;  %p3077_p4 = scmp.lt.s32.totalorder %s3068_s29, %s3068_s29 }
 0x15c   : > { %p3071_p7 = pnand %p3069_p5, %p3415_p8  ;;  %p3078_p11 = por %p3077_p4, %p3076_p10 }
 0x15e   : > { %p3072_p9 = pneg %p3071_p7 }
 0x160   : > { %p3079_p12 = pnand %p3078_p11, %p3072_p9 }
 0x162   : > { %3082 = shalt.err (!%p3079_p12)
}
 0x163   : > { %s4294_s28 = sld [smem:[#allocation37_spill]]  ;;  %s4295_s25 = sld [smem:[#allocation38_spill]] }
 0x164   : > { %2500 = dma.hbm_to_vmem [thread:$0]  (!%p3399_p6), %s4240_s14, 128, %s542_s26, [#allocation24]  }
 0x165   : > { %s2261_s15 = sadd.s32 4294967294, %s3241_s21   ;;  %s3665_s30 = sadd.s32 1, %s3241_s21  }
 0x166   : > { %s47_s24 = sadd.s32 1, %s3237_s20  ;;  %s44_s16 = ssub.s32 %s3241_s21, %s3665_s30 }
 0x167   : > { %p54_p8 = scmp.ne.s32.totalorder %s3237_s20, %s3233_s19  ;;  %p45_p13 = scmp.eq.s32.totalorder %s44_s16, 0 }
 0x168   : > { %p55_p0 = scmp.eq.s32.totalorder %s3241_s21, 0  ;;  %p389_p9 = scmp.eq.s32.totalorder %s2261_s15, 1 }
 0x169   : > { %p60_p1 = scmp.ne.s32.totalorder %s3233_s19, %s4294_s28  ;;  %p383_p3 = scmp.eq.s32.totalorder %s4295_s25, 1 }
 0x16a   : > { %s3677_s1 = scalar_select %p45_p13, %s3237_s20, %s47_s24  }
 0x16b   : > { %p56_p2 = por %p55_p0, %p54_p8  ;;  %p4296_p5 = scmp.eq.s32.totalorder %s4295_s25, 0 }
 0x16c   : > { %p3685_p6 = por %p383_p3, %p54_p8  ;;  %p2525_p10 = scmp.lt.s32.totalorder %s3241_s21, 2 }
 0x16d   : > { %p3681_p7 = por %p4296_p5, %p60_p1  ;;  %s3691_s17 = sand.u32 1, %s3237_s20  }
 0x16e   : > { %s4298_s26 = scalar_select %p3685_p6, 1, 0 }
 0x16f   : > { %p3693_p4 = por %p389_p9, %p60_p1  ;;  %s2277_s23 = sshll.u32 %s3691_s17, 3 }
 0x170   : > { %s2364_s29 = sshll.u32 %s3241_s21, 7  ;;  %s4300_s28 = sld [smem:[#allocation40_spill]] }
 0x171   : > { %s4299_s18 = scalar_select %p3693_p4, 1, 0 }
 0x172   : > { %s556_s15 = scalar_lea.vmem [#allocation2], %s2277_s23  ;;  %p3704_p11 = pnand %p2525_p10, %p56_p2 }
 0x173   : > { %s564_s24 = sshll.u32 %s556_s15, 4  ;;  %s553_s3 = scalar_lea.sflag [#allocation3], %s3691_s17  ;;  %s3708_s24 = int_to_ptr.vmem [resolvable:$true] %s564_s24 }
 0x174   : > { %p3085_p8 = pneg %p3704_p11 }
 0x176   : > { %s3702_s25 = scalar_lea.hbm %s4300_s28, %s2364_s29  ;;  %s3088_s0 = scalar_lea.hbm %s4300_s28, 256 }
 0x177   : > { %s3083_s4 = scalar_lea.hbm %s3702_s25, 128  ;;  %p3089_p1 = scmp.lt.u32.totalorder %s3702_s25, %s4300_s28 }
 0x178   : > { %p3084_p12 = scmp.ne.s32.totalorder %s3702_s25, %s3083_s4  ;;  %p3090_p3 = scmp.lt.u32.totalorder %s3088_s0, %s3083_s4 }
 0x179   : > { %p3092_p5 = scmp.lt.u32.totalorder %s3083_s4, %s3702_s25 }
 0x17a   : > { %p3086_p13 = pnand %p3085_p8, %p3084_p12  ;;  %p3091_p2 = por %p3090_p3, %p3089_p1 }
 0x17c   : > { %p3087_p0 = pneg %p3086_p13  ;;  %p3093_p9 = por %p3092_p5, %p3091_p2 }
 0x17e   : > { %p3094_p10 = pnand %p3093_p9, %p3087_p0 }
 0x180   : > { %3097 = shalt.err (!%p3094_p10)
}
 0x181   : > { %s3098_s2 = scalar_lea.vmem %s3708_s24, 128  ;;  %s3256_s23 = smov [#allocation2]  }
 0x182   : > { %p3099_p12 = scmp.ne.s32.totalorder %s3708_s24, %s3098_s2  ;;  %s3103_s29 = sshll.u32 %s3256_s23, 4  ;;  %s3104_s29 = int_to_ptr.vmem [resolvable:$false] %s3103_s29 }
 0x183   : > { %s3105_s22 = scalar_lea.vmem %s3104_s29, 256  ;;  %p3106_p6 = scmp.lt.s32.totalorder %s3708_s24, %s3104_s29 }
 0x184   : > { %p3101_p13 = pnand %p3099_p12, %p3085_p8  ;;  %p3107_p1 = scmp.lt.s32.totalorder %s3105_s22, %s3098_s2 }
 0x186   : > { %p3102_p4 = pneg %p3101_p13  ;;  %p3108_p3 = por %p3107_p1, %p3106_p6 }
 0x188   : > { %p3109_p2 = pnand %p3108_p3, %p3102_p4 }
 0x18a   : > { %3112 = shalt.err (!%p3109_p2)
}
 0x18b   : > { %2504 = dma.hbm_to_vmem [thread:$0]  (!%p3704_p11), %s3702_s25, 128, %s3708_s24, %s553_s3  }
 0x18c   : > { %s4302_s4 = sshll.u32 %s3691_s17, 4  ;;  %s571_s23 = sand.u32 1, %s3241_s21  }
 0x18d   : > { %s575_s0 = scalar_lea.vmem [#allocation5], %s4302_s4  ;;  %s2365_s29 = sshll.u32 %s3241_s21, 8 }
 0x18e   : > { %s582_s15 = sshll.u32 %s575_s0, 4  ;;  %s4303_s5 = sld [smem:[#allocation41_spill]]  ;;  %s3740_s15 = int_to_ptr.vmem [resolvable:$true] %s582_s15 }
 0x18f   : > { %s3748_s7 = scalar_lea.sflag [#allocation6], %s571_s23 }
 0x194   : > { %s3746_s6 = scalar_lea.hbm %s4303_s5, %s2365_s29  ;;  %s3118_s25 = scalar_lea.hbm %s4303_s5, 512 }
 0x195   : > { %s3113_s8 = scalar_lea.hbm %s3746_s6, 256  ;;  %p3119_p5 = scmp.lt.u32.totalorder %s3746_s6, %s4303_s5 }
 0x196   : > { %p3114_p6 = scmp.ne.s32.totalorder %s3746_s6, %s3113_s8  ;;  %p3120_p9 = scmp.lt.u32.totalorder %s3118_s25, %s3113_s8 }
 0x197   : > { %p3122_p12 = scmp.lt.u32.totalorder %s3113_s8, %s3746_s6 }
 0x198   : > { %p3116_p4 = pnand %p3114_p6, %p3085_p8  ;;  %p3121_p10 = por %p3120_p9, %p3119_p5 }
 0x19a   : > { %p3117_p0 = pneg %p3116_p4  ;;  %p3123_p13 = por %p3122_p12, %p3121_p10 }
 0x19c   : > { %p3124_p1 = pnand %p3123_p13, %p3117_p0 }
 0x19e   : > { %3127 = shalt.err (!%p3124_p1)
}
 0x19f   : > { %s3128_s0 = scalar_lea.vmem %s3740_s15, 256  ;;  %s3257_s23 = smov [#allocation5]  }
 0x1a0   : > { %p3129_p3 = scmp.ne.s32.totalorder %s3740_s15, %s3128_s0  ;;  %s3133_s29 = sshll.u32 %s3257_s23, 4  ;;  %s3134_s29 = int_to_ptr.vmem [resolvable:$false] %s3133_s29 }
 0x1a1   : > { %s3135_s2 = scalar_lea.vmem %s3134_s29, 512  ;;  %p3136_p4 = scmp.lt.s32.totalorder %s3740_s15, %s3134_s29 }
 0x1a2   : > { %p3131_p2 = pnand %p3129_p3, %p3085_p8  ;;  %p3137_p5 = scmp.lt.s32.totalorder %s3135_s2, %s3128_s0 }
 0x1a4   : > { %p3132_p6 = pneg %p3131_p2  ;;  %p3138_p9 = por %p3137_p5, %p3136_p4 }
 0x1a6   : > { %p3139_p10 = pnand %p3138_p9, %p3132_p6 }
 0x1a8   : > { %3142 = shalt.err (!%p3139_p10)
}
 0x1a9   : > { %s3258_s8 = smov 128   ;;  %s3259_s22 = smov 8  }
 0x1aa   : > { %2507 = dma.hbm_to_vmem [thread:$0]  (!%p3704_p11), %s3746_s6, 256, %s3740_s15, %s3748_s7, %s3258_s8, %s3258_s8, %s3259_s22  }
 0x1ab   : > { %s4304_s3 = sld [smem:[#allocation39_spill]] }
 0x1b1   : > { %p4305_p8 = scmp.ne.s32.totalorder %s4304_s3, 0 }
 0x1b2   : > { %s3777_s17 = sand.u32 (!%p4305_p8), 1, %s3233_s19  }
 0x1b3   : > { %594 = sbr.rel (%p4305_p8) target bundleno = 2314 (0x90a), region = 80  ;;  %s2284_s25 = sshll.u32 (!%p4305_p8), %s3777_s17, 3 }
 0x1b4   : > { %s597_s24 = scalar_lea.sflag (!%p4305_p8), [#allocation3], %s3777_s17  ;;  %s600_s4 = scalar_lea.vmem (!%p4305_p8), [#allocation2], %s2284_s25 }
 0x1ba   : > { %3188 = dma.done.wait (%p3681_p7), %s597_s24, 128  }
 0x1bb   : > { %3190 = vsyncadd (%p3681_p7), %s597_s24, 4294967168  ;;  %s4306_s0 = sld [smem:[#allocation38_spill]]  ;;  %s4252_s7 = sshll.u32 %s3777_s17, 4 }
 0x1bc   : > { %s3789_s15 = scalar_lea.vmem [#allocation5], %s4252_s7 }
 0x1c1   : > { %s605_s6 = sand.u32 1, %s4306_s0  }
 0x1c2   : > { %s606_s16 = scalar_lea.sflag [#allocation6], %s605_s6 }
 0x1c3   : > { %3192 = dma.done.wait (%p3681_p7), %s606_s16, 256  }
 0x1c4   : > { %3194 = vsyncadd (%p3681_p7), %s606_s16, 4294967040  ;;  %p4307_p11 = scmp.eq.s32.totalorder %s4306_s0, 0 }
 0x1c6   : > { %3196 = dma.done.wait (%p4307_p11), [#allocation6], 64   ;;  %p4308_p0 = pmov %p4307_p11 }
 0x1c8   : > { %3198 = vsyncadd (%p4308_p0), [#allocation6], 4294967232  ;;  %p4309_p12 = pmov %p4308_p0 }
 0x1c9   : > { %p4310_p13 = pmov %p4308_p0 }
 0x1ca   : > { %3200 = dma.done.wait (%p4309_p12), [#allocation9], 256  }
 0x1cb   : > { %3202 = vsyncadd (%p4310_p13), [#allocation9], 4294967040  ;;  %p4311_p1 = pmov %p4308_p0 }
 0x1cc   : > { %p4312_p3 = pmov %p4308_p0 }
 0x1cd   : > { %3204 = dma.done.wait (%p4311_p1), [#allocation12], 192  }
 0x1ce   : > { %3206 = vsyncadd (%p4312_p3), [#allocation12], 4294967104  ;;  %p4313_p7 = pmov %p4308_p0 }
 0x1cf   : > { %p4314_p2 = pmov %p4308_p0 }
 0x1d0   : > { %3208 = dma.done.wait (%p4313_p7), [#allocation15], 192  }
 0x1d1   : > { %3210 = vsyncadd (%p4314_p2), [#allocation15], 4294967104  ;;  %p4315_p6 = pmov %p4308_p0 }
 0x1d2   : > { %p4316_p4 = pmov %p4308_p0 }
 0x1d3   : > { %3212 = dma.done.wait (%p4315_p6), [#allocation18], 256  }
 0x1d4   : > { %3214 = vsyncadd (%p4316_p4), [#allocation18], 4294967040  ;;  %p4317_p5 = pmov %p4308_p0 }
 0x1d5   : > { %p4318_p9 = pmov %p4308_p0 }
 0x1d6   : > { %3216 = dma.done.wait (%p4317_p5), [#allocation21], 256  }
 0x1d7   : > { %3218 = vsyncadd (%p4318_p9), [#allocation21], 4294967040  ;;  %p4319_p10 = pmov %p4308_p0 }
 0x1d8   : > { %p4320_p8 = pmov %p4308_p0 }
 0x1d9   : > { %3220 = dma.done.wait (%p4319_p10), [#allocation24], 192  }
 0x1da   : > { %3222 = vsyncadd (%p4320_p8), [#allocation24], 4294967104  ;;  %v3823_v0 = vld [vmem:[%s600_s4] sm:$0xff]  ;;  %v3260_v1 = vmov 0   ;;  %v3833_v3 = vld [vmem:[#allocation7] sm:$0xf]  ;;  %v714_v8 = vlaneseq }
 0x1db   : > { %907 = vmatprep.mubr.bf16.mxu0 %v3260_v1  ;;  %957 = vmatprep.mubr.bf16.mxu1 %v3260_v1  ;;  %v3829_v2 = vcombine.high %v3823_v0, %v3823_v0  ;;  %s3261_s27 = smov 16   ;;  %s3262_s23 = smov 15   ;;  %v2300_v5 = vcombine.low %v3833_v3, %v3833_v3  ;;  %v2690_v6 = vld [vmem:[#allocation7] ss:$0 sps:$4 sm:$0xff]   ;;  %v1362_v7 = vld [vmem:[#allocation8] sm:$0xff]  ;;  %vm4264_vm9 = vcmask 1041408  }
 0x1dc   : > { %2646 = vset.pattern.permute.xlu0 %v3260_v1  ;;  %2647 = vset.pattern.permute.xlu1 %v3260_v1  ;;  %s3263_s29 = smov 17   ;;  %s3264_s2 = smov 124   ;;  %v3848_v9 = vand.u32 127, %v714_v8  ;;  %vm4263_vm14 = vcmask 31744  }
 0x1dd   : > { %v2606_v4 = vpack.i.bf16 %v3829_v2, %v3823_v0  ;;  %s3265_s8 = smov 1   ;;  %s3266_s22 = smov 120   ;;  %v3933_v57 = vpack.c.bf16 %v3829_v2, %v3829_v2 }
 0x1de   : > { %s3267_s3 = smov 127   ;;  %s3268_s25 = smov 116   ;;  %v716_v10 = vadd.s32 128, %v3848_v9  ;;  %v717_v12 = vcvt.s32.f32 %v3848_v9  ;;  %vm4253_vm3 = vcmp.lt.s32.totalorder %v3848_v9, 15  ;;  %vm757_vm4 = vcmp.lt.s32.totalorder %v3848_v9, 16 }
 0x1df   : > { %2607 = vrot.lane.b32.xlu0 %v2606_v4, %s3261_s27  ;;  %2617 = vrot.lane.b32.xlu1 %v2606_v4, %s3262_s23  ;;  %s3269_s24 = smov 113   ;;  %s3270_s4 = smov 112   ;;  %vm4257_vm10 = vcmp.lt.s32.totalorder %v3848_v9, 17  ;;  %vm4255_vm15 = vcmp.lt.s32.totalorder %v3848_v9, 1 }
 0x1e0   : > { %s3271_s6 = smov 108   ;;  %s3272_s16 = smov 111   ;;  %v718_v11 = vcvt.s32.f32 %v716_v10  ;;  %v719_v14 = vadd.f32 0.5, %v717_v12 }
 0x1e1   : > { %s3275_s7 = smov 96   ;;  %p4365_p0 = scmp.ne.s32.totalorder %s4298_s26, 0 }
 0x1e2   : > { %v720_v13 = vadd.f32 0.5, %v718_v11  ;;  %v721_v16 = vmul.f32 0.0625, %v719_v14 }
 0x1e3   : > { %2612 = vrot.lane.b32.xlu0 %v2606_v4, %s3263_s29  ;;  %862 = vrot.lane.b32.xlu1 %v2300_v5, %s3264_s2  ;;  %s3273_s2 = smov 104  }
 0x1e4   : > { %v722_v15 = vmul.f32 0.0625, %v720_v13  ;;  %v3854_v18 = vfloor.f32 %v721_v16 }
 0x1e6   : > { %v3852_v17 = vfloor.f32 %v722_v15  ;;  %v725_v20 = vmul.f32 16.0, %v3854_v18  ;;  %vm4254_vm5 = vcmp.gt.f32.partialorder %v3854_v18, 0.5 }
 0x1e7   : > { %2622 = vrot.lane.b32.xlu0 %v2606_v4, %s3265_s8  ;;  %968 = vrot.lane.b32.xlu1 %v2300_v5, %s3266_s22  ;;  %s3274_s22 = smov 100  }
 0x1e8   : > { %v726_v19 = vmul.f32 16.0, %v3852_v17  ;;  %v3860_v22 = vsub.f32 %v717_v12, %v725_v20  ;;  %vm4256_vm2 = vcmp.gt.f32.partialorder %v3852_v17, 0.5 }
 0x1ea   : > { %v3858_v21 = vsub.f32 %v718_v11, %v726_v19  ;;  %vm4270_vm1 = vcmp.lt.f32.partialorder %v3860_v22, 14.5  ;;  %vm4259_vm6 = vcmp.gt.f32.partialorder %v3860_v22, 0.5 }
 0x1eb   : > { %2627 = vrot.lane.b32.xlu0 %v2606_v4, %s3267_s3  ;;  %1024 = vrot.lane.b32.xlu1 %v2300_v5, %s3268_s25  ;;  %vm3881_vm8 = vmand %vm4254_vm5, %vm4270_vm1 }
 0x1ec   : > { %vm774_vm0 = vcmp.lt.f32.partialorder %v3858_v21, 14.5  ;;  %vm4261_vm11 = vcmp.gt.f32.partialorder %v3858_v21, 0.5  ;;  %vm3903_vm12 = vmand %vm4254_vm5, %vm4259_vm6 }
 0x1ed   : > { %vm3873_vm7 = vmand %vm4256_vm2, %vm774_vm0 }
 0x1ee   : > { %vm3915_vm13 = vmand %vm4256_vm2, %vm4261_vm11 }
 0x1ef   : > { %2632 = vrot.lane.b32.xlu0 %v2606_v4, %s3269_s24  ;;  %1080 = vrot.lane.b32.xlu1 %v2300_v5, %s3270_s4 }
 0x1f3   : > { %2637 = vrot.lane.b32.xlu0 %v2606_v4, %s3270_s4  ;;  %1140 = vrot.lane.b32.xlu1 %v2690_v6, %s3271_s6 }
 0x1f7   : > { %2642 = vrot.lane.b32.xlu0 %v2606_v4, %s3272_s16  ;;  %1196 = vrot.lane.b32.xlu1 %v2690_v6, %s3273_s2 }
 0x1fb   : > { %1252 = vrot.lane.b32.xlu0 %v2690_v6, %s3274_s22  ;;  %1308 = vrot.lane.b32.xlu1 %v2690_v6, %s3275_s7  ;;  %s2366_s7 = sshll.u32 %s4306_s0, 8  ;;  %s2031_s0 = scalar_lea.sflag [#allocation4], %s3777_s17 }
 0x1ff   : > { %1365 = vperm.xlu0 %2646, %v1362_v7   ;;  %v1078_v7 = vpack.c.bf16 %v3823_v0, %v3823_v0 }
 0x201   : > { %v3976_v20 = vsel %vm4264_vm9, %v1078_v7, 0 }
 0x251   : > { %v2608_v23 = vpop.permute.xlu0 %2607  ;;  %v2618_v24 = vpop.permute.xlu1 %2617 }
 0x252   : > { %v2610_v26 = vunpack.i.h.bf16 %v2608_v23  ;;  %v2609_v27 = vunpack.i.l.bf16 %v2608_v23  ;;  %v2620_v28 = vunpack.i.h.bf16 %v2618_v24  ;;  %v2619_v29 = vunpack.i.l.bf16 %v2618_v24 }
 0x254   : > { %v771_v31 = vsel %vm4253_vm3, %v2619_v29, %v2620_v28  ;;  %v772_v32 = vsel %vm4253_vm3, %v2620_v28, %v2619_v29  ;;  %v758_v33 = vsel %vm757_vm4, %v2609_v27, %v2610_v26  ;;  %v759_v34 = vsel %vm757_vm4, %v2610_v26, %v2609_v27 }
 0x255   : > { %v2613_v35 = vpop.permute.xlu0 %2612  ;;  %v765_v36 = vsel %vm4256_vm2, %v758_v33, 0.0  ;;  %v764_v37 = vsel %vm4254_vm5, %v759_v34, 0.0  ;;  %v863_v38 = vpop.permute.xlu1 %862  ;;  %v782_v40 = vsel %vm3873_vm7, %v771_v31, 0.0  ;;  %v781_v41 = vsel %vm3881_vm8, %v772_v32, 0.0 }
 0x256   : > { %v2615_v42 = vunpack.i.h.bf16 %v2613_v35  ;;  %v2614_v43 = vunpack.i.l.bf16 %v2613_v35  ;;  %v858_v44 = vpack.c.bf16 %v765_v36, %v765_v36  ;;  %v857_v45 = vpack.c.bf16 %v764_v37, %v764_v37 }
 0x257   : > { %v967_v47 = vpack.c.bf16 %v782_v40, %v782_v40  ;;  %v966_v48 = vpack.c.bf16 %v781_v41, %v781_v41  ;;  %vm4258_vm3 = vcmp.lt.s32.totalorder %v3848_v9, 127  ;;  %vm4268_vm5 = vcmp.lt.f32.partialorder %v3852_v17, 14.5 }
 0x258   : > { %2301 = vmatprep.subr.msk.bf16.mxu0 %vm4264_vm9, %v858_v44  ;;  %v870_v49 = vsel %vm4264_vm9, %v857_v45, 0  ;;  %v739_v50 = vsel %vm4257_vm10, %v2614_v43, %v2615_v42  ;;  %v740_v51 = vsel %vm4257_vm10, %v2615_v42, %v2614_v43  ;;  %vm4260_vm2 = vcmp.lt.s32.totalorder %v3848_v9, 113  ;;  %vm3971_vm10 = vmand %vm4268_vm5, %vm4261_vm11 }
 0x259   : > { %876 = vmatpush1.bf16.msra.mxu0 %v870_v49  ;;  %v752_v52 = vsel %vm3915_vm13, %v739_v50, 0.0  ;;  %v2623_v53 = vpop.permute.xlu0 %2622  ;;  %v751_v54 = vsel %vm3903_vm12, %v740_v51, 0.0  ;;  %v974_v55 = vsel %vm4264_vm9, %v966_v48, 0  ;;  %v969_v56 = vpop.permute.xlu1 %968 }
 0x25a   : > { %v856_v58 = vpack.c.bf16 %v752_v52, %v752_v52  ;;  %v2625_v59 = vunpack.i.h.bf16 %v2623_v53  ;;  %v2624_v60 = vunpack.i.l.bf16 %v2623_v53  ;;  %v855_v61 = vpack.c.bf16 %v751_v54, %v751_v54  ;;  %2305 = vmatprep.subr.msk.bf16.mxu0 %vm4264_vm9, %v967_v47  ;;  %v1717_v47 = vld [vmem:[#allocation16] sm:$0xf] }
 0x25c   : > { %2302 = vmatmul.mubr.msk.bf16.vlgmr.msra.gmra.mrb[0].mxu0 %vm4263_vm14, %v863_v38  ;;  %2303 = vmatprep.subr.msk.bf16.mxu1 %vm4264_vm9, %v856_v58  ;;  %v788_v62 = vsel %vm4255_vm15, %v2624_v60, %v2625_v59  ;;  %v789_v63 = vsel %vm4255_vm15, %v2625_v59, %v2624_v60  ;;  %v920_v4 = vsel %vm4264_vm9, %v855_v61, 0  ;;  %vm4265_vm15 = vcmp.lt.f32.partialorder %v3854_v18, 14.5 }
 0x25d   : > { %v795_v2 = vsel %vm4261_vm11, %v788_v62, 0.0  ;;  %926 = vmatpush1.bf16.msra.mxu1 %v920_v4  ;;  %980 = vmatpush1.bf16.msra.mxu0 %v974_v55  ;;  %v2628_v5 = vpop.permute.xlu0 %2627  ;;  %v794_v6 = vsel %vm4259_vm6, %v789_v63, 0.0  ;;  %v1025_v13 = vpop.permute.xlu1 %1024  ;;  %vm4016_vm11 = vmand %vm4268_vm5, %vm774_vm0 }
 0x25e   : > { %1011 = vmatprep.mubr.bf16.mxu0 %v3260_v1  ;;  %v1023_v8 = vpack.c.bf16 %v795_v2, %v795_v2  ;;  %v2630_v10 = vunpack.i.h.bf16 %v2628_v5  ;;  %v2629_v11 = vunpack.i.l.bf16 %v2628_v5  ;;  %v1022_v12 = vpack.c.bf16 %v794_v6, %v794_v6  ;;  %2309 = vmatprep.subr.msk.bf16.mxu0 %vm4264_vm9, %v3933_v57 }
 0x260   : > { %2304 = vmatmul.mubr.msk.bf16.vlgmr.msra.gmra.mrb[0].mxu1 %vm4263_vm14, %v3833_v3  ;;  %2307 = vmatprep.subr.msk.bf16.mxu1 %vm4264_vm9, %v1023_v8  ;;  %v801_v0 = vsel %vm4258_vm3, %v2629_v11, %v2630_v10  ;;  %v802_v14 = vsel %vm4258_vm3, %v2630_v10, %v2629_v11  ;;  %v1030_v15 = vsel %vm4264_vm9, %v1022_v12, 0  ;;  %vm3984_vm3 = vmand %vm4265_vm15, %vm4259_vm6  ;;  %vm4262_vm6 = vcmp.lt.s32.totalorder %v3848_v9, 112 }
 0x261   : > { %v808_v16 = vsel %vm774_vm0, %v802_v14, 0.0  ;;  %1036 = vmatpush1.bf16.msra.mxu1 %v1030_v15  ;;  %1067 = vmatprep.mubr.bf16.mxu1 %v3260_v1  ;;  %v2633_v19 = vpop.permute.xlu0 %2632  ;;  %v807_v23 = vsel %vm4270_vm1, %v801_v0, 0.0  ;;  %v1081_v34 = vpop.permute.xlu1 %1080  ;;  %v3276_v8 = vmov 0.0  }
 0x262   : > { %v2635_v24 = vunpack.i.h.bf16 %v2633_v19  ;;  %v2634_v26 = vunpack.i.l.bf16 %v2633_v19  ;;  %v1136_v27 = vpack.c.bf16 %v808_v16, %v808_v16  ;;  %v1135_v28 = vpack.c.bf16 %v807_v23, %v807_v23 }
 0x264   : > { %2306 = vmatmul.mubr.msk.bf16.vlgmr.msra.gmra.mrb[4].mxu0 %vm4263_vm14, %v969_v56  ;;  %v814_v31 = vsel %vm4260_vm2, %v2634_v26, %v2635_v24  ;;  %v815_v32 = vsel %vm4260_vm2, %v2635_v24, %v2634_v26  ;;  %2312 = vmatprep.subr.msk.bf16.mxu1 %vm4264_vm9, %v1136_v27  ;;  %v1146_v36 = vsel %vm4264_vm9, %v1135_v28, 0  ;;  %vm4269_vm2 = vcmp.lt.s32.totalorder %v3848_v9, 111 }
 0x265   : > { %v825_v33 = vsel %vm3971_vm10, %v815_v32, 0.0  ;;  %1092 = vmatpush1.bf16.msra.mxu0 %v3976_v20  ;;  %1123 = vmatprep.mubr.bf16.mxu0 %v3260_v1  ;;  %v2638_v35 = vpop.permute.xlu0 %2637  ;;  %v824_v37 = vsel %vm3984_vm3, %v814_v31, 0.0  ;;  %v1141_v56 = vpop.permute.xlu1 %1140 }
 0x266   : > { %v2640_v38 = vunpack.i.h.bf16 %v2638_v35  ;;  %v2639_v40 = vunpack.i.l.bf16 %v2638_v35  ;;  %v1195_v41 = vpack.c.bf16 %v825_v33, %v825_v33  ;;  %v1194_v42 = vpack.c.bf16 %v824_v37, %v824_v37 }
 0x268   : > { %2308 = vmatmul.mubr.msk.bf16.vlgmr.msra.gmra.mrb[4].mxu1 %vm4263_vm14, %v1025_v13  ;;  %v831_v43 = vsel %vm4262_vm6, %v2639_v40, %v2640_v38  ;;  %v832_v44 = vsel %vm4262_vm6, %v2640_v38, %v2639_v40  ;;  %2314 = vmatprep.subr.msk.bf16.mxu0 %vm4264_vm9, %v1195_v41  ;;  %v1202_v49 = vsel %vm4264_vm9, %v1194_v42, 0  ;;  %vm4027_vm6 = vmand %vm4265_vm15, %vm4270_vm1 }
 0x269   : > { %v838_v45 = vsel %vm4268_vm5, %v832_v44, 0.0  ;;  %1152 = vmatpush1.bf16.msra.mxu1 %v1146_v36  ;;  %1183 = vmatprep.mubr.bf16.mxu1 %v3260_v1  ;;  %v2643_v48 = vpop.permute.xlu0 %2642  ;;  %v837_v50 = vsel %vm4265_vm15, %v831_v43, 0.0  ;;  %v1197_v2 = vpop.permute.xlu1 %1196  ;;  %vm4267_vm15 = vcmask 64512  }
 0x26a   : > { %v2645_v51 = vunpack.i.h.bf16 %v2643_v48  ;;  %v2644_v52 = vunpack.i.l.bf16 %v2643_v48  ;;  %v1251_v53 = vpack.c.bf16 %v838_v45, %v838_v45  ;;  %v1250_v54 = vpack.c.bf16 %v837_v50, %v837_v50 }
 0x26c   : > { %2310 = vmatmul.mubr.msk.bf16.vlgmr.msra.gmra.mrb[8].mxu0 %vm4263_vm14, %v1081_v34  ;;  %v844_v58 = vsel %vm4269_vm2, %v2644_v52, %v2645_v51  ;;  %v845_v59 = vsel %vm4269_vm2, %v2645_v51, %v2644_v52  ;;  %2316 = vmatprep.subr.msk.bf16.mxu1 %vm4264_vm9, %v1251_v53  ;;  %v1258_v62 = vsel %vm4264_vm9, %v1250_v54, 0  ;;  %vm4340_vm2 = vcmp.gt.f32.partialorder %v3854_v18, 0.5 }
 0x26d   : > { %v853_v60 = vsel %vm4016_vm11, %v845_v59, 0.0  ;;  %1208 = vmatpush1.bf16.msra.mxu0 %v1202_v49  ;;  %1239 = vmatprep.mubr.bf16.mxu0 %v3260_v1  ;;  %v852_v61 = vsel %vm4027_vm6, %v844_v58, 0.0  ;;  %v1253_v6 = vpop.permute.xlu0 %1252  ;;  %v1309_v7 = vpop.permute.xlu1 %1308  ;;  %vm2330_vm1 = vmpackc.low %vm4340_vm2, %vm3903_vm12  ;;  %vm4345_vm12 = vcmp.gt.f32.partialorder %v3858_v21, 0.5 }
 0x26e   : > { %v1307_v63 = vpack.c.bf16 %v853_v60, %v853_v60  ;;  %v1306_v4 = vpack.c.bf16 %v852_v61, %v852_v61 }
 0x270   : > { %2313 = vmatmul.mubr.msk.bf16.vlgmr.msra.gmra.mrb[8].mxu1 %vm4263_vm14, %v1141_v56  ;;  %2318 = vmatprep.subr.msk.bf16.mxu0 %vm4264_vm9, %v1307_v63  ;;  %v1314_v5 = vsel %vm4264_vm9, %v1306_v4, 0  ;;  %vm1592_vm9 = vcmask 130048  }
 0x271   : > { %1264 = vmatpush1.bf16.msra.mxu1 %v1258_v62  ;;  %1295 = vmatprep.mubr.bf16.mxu1 %v3260_v1 }
 0x272   : > { %2377 = vmatprep.subr.mxu1 %v3276_v8 }
 0x274   : > { %2315 = vmatmul.mubr.msk.bf16.vlgmr.msra.gmra.mrb[12].mxu0 %vm4263_vm14, %v1197_v2 }
 0x275   : > { %1320 = vmatpush1.bf16.msra.mxu0 %v1314_v5  ;;  %1351 = vmatprep.mubr.bf16.mxu0 %v3260_v1 }
 0x276   : > { %2387 = vmatprep.subr.bf16.mxu0 %v3276_v8 }
 0x278   : > { %2317 = vmatmul.mubr.msk.bf16.vlgmr.msra.gmra.mrb[12].mxu1 %vm4263_vm14, %v1253_v6 }
 0x27c   : > { %2319 = vmatmul.mubr.msk.bf16.vlgmr.msra.gmra.mrb[16].mxu0 %vm4263_vm14, %v1309_v7  ;;  %vm4266_vm14 = vmmov 0  }
 0x27d   : > { %2379 = vmatprep.mubr.msk.f32.mxu1 %vm4266_vm14, %v3276_v8  ;;  %2389 = vmatprep.mubr.msk.bf16.mxu0 %vm4266_vm14, %v3276_v8 }
 0x32f   : > { %v909_v10 = vpop.f32.mrb[0].mxu0 }
 0x330   : > { %v911_v11 = vpop.f32.mrb[1].mxu0 }
 0x331   : > { %v913_v12 = vpop.f32.mrb[2].mxu0 }
 0x332   : > { %v914_v13 = vpop.f32.mrb[3].mxu0 }
 0x333   : > { %v959_v0 = vpop.f32.mrb[0].mxu1 }
 0x334   : > { %v960_v14 = vadd.f32 %v959_v0, %v909_v10  ;;  %v961_v15 = vpop.f32.mrb[1].mxu1  ;;  %v1366_v10 = vpop.permute.xlu0 %1365 }
 0x335   : > { %v962_v16 = vadd.f32 %v961_v15, %v911_v11  ;;  %v963_v19 = vpop.f32.mrb[2].mxu1 }
 0x336   : > { %v964_v23 = vpop.f32.mrb[3].mxu1 }
 0x337   : > { %v1013_v24 = vpop.f32.mrb[4].mxu0 }
 0x338   : > { %v1020_v26 = vadd.f32 %v1013_v24, %v960_v14  ;;  %v1015_v27 = vpop.f32.mrb[5].mxu0 }
 0x339   : > { %v1021_v28 = vadd.f32 %v1015_v27, %v962_v16  ;;  %v1017_v31 = vpop.f32.mrb[6].mxu0  ;;  %v1573_v27 = vld [vmem:[%s3789_s15] sm:$0xff] }
 0x33a   : > { %v1018_v32 = vpop.f32.mrb[7].mxu0  ;;  %v2324_v31 = vmul.f32 -1.442695, %v1573_v27 }
 0x33b   : > { %v1069_v33 = vpop.f32.mrb[4].mxu1 }
 0x33c   : > { %v1076_v34 = vadd.f32 %v1069_v33, %v1020_v26  ;;  %v1071_v35 = vpop.f32.mrb[5].mxu1  ;;  %2691 = vpow2.f32 %v2324_v31 }
 0x33d   : > { %v1077_v36 = vadd.f32 %v1071_v35, %v1021_v28  ;;  %v1073_v37 = vpop.f32.mrb[6].mxu1  ;;  %v1574_v28 = vld [vmem:[%s3789_s15 + $0x8] sm:$0xff]  ;;  %s4363_s15 = sshll.u32 %s3777_s17, 4 }
 0x33e   : > { %v1074_v38 = vpop.f32.mrb[7].mxu1  ;;  %v2325_v32 = vmul.f32 -1.442695, %v1574_v28 }
 0x33f   : > { %v1125_v40 = vpop.f32.mrb[8].mxu0 }
 0x340   : > { %v1132_v41 = vadd.f32 %v1125_v40, %v1076_v34  ;;  %v1127_v42 = vpop.f32.mrb[9].mxu0  ;;  %2693 = vpow2.f32 %v2325_v32 }
 0x341   : > { %v1133_v43 = vadd.f32 %v1127_v42, %v1077_v36  ;;  %v1129_v44 = vpop.f32.mrb[10].mxu0 }
 0x342   : > { %v1130_v45 = vpop.f32.mrb[11].mxu0  ;;  %v4072_v44 = vld [vmem:[#allocation22] sm:$0xff] }
 0x343   : > { %v1185_v48 = vpop.f32.mrb[8].mxu1 }
 0x344   : > { %v1192_v49 = vadd.f32 %v1185_v48, %v1132_v41  ;;  %v1187_v50 = vpop.f32.mrb[9].mxu1 }
 0x345   : > { %v1193_v51 = vadd.f32 %v1187_v50, %v1133_v43  ;;  %v1189_v52 = vpop.f32.mrb[10].mxu1  ;;  %v1589_v43 = vld [vmem:[#allocation13] sm:$0xf] }
 0x346   : > { %v1190_v53 = vpop.f32.mrb[11].mxu1  ;;  %v2692_v33 = vpop.eup %2691 }
 0x347   : > { %v1241_v54 = vpop.f32.mrb[12].mxu0  ;;  %v1581_v35 = vadd.f32 1.0, %v2692_v33 }
 0x348   : > { %v1248_v56 = vadd.f32 %v1241_v54, %v1192_v49  ;;  %v1243_v58 = vpop.f32.mrb[13].mxu0 }
 0x349   : > { %v1249_v59 = vadd.f32 %v1243_v58, %v1193_v51  ;;  %v1245_v60 = vpop.f32.mrb[14].mxu0  ;;  %2695 = vrcp.f32 %v1581_v35 }
 0x34a   : > { %v1246_v61 = vpop.f32.mrb[15].mxu0  ;;  %v2694_v34 = vpop.eup %2693 }
 0x34b   : > { %v1297_v62 = vpop.f32.mrb[12].mxu1  ;;  %v1582_v36 = vadd.f32 1.0, %v2694_v34 }
 0x34c   : > { %v1304_v63 = vadd.f32 %v1297_v62, %v1248_v56  ;;  %v1299_v4 = vpop.f32.mrb[13].mxu1 }
 0x34d   : > { %v1305_v2 = vadd.f32 %v1299_v4, %v1249_v59  ;;  %v1301_v5 = vpop.f32.mrb[14].mxu1  ;;  %2697 = vrcp.f32 %v1582_v36  ;;  %v1370_v59 = vld [vmem:[#allocation10] sm:$0xff]  ;;  %v1371_v4 = vld [vmem:[#allocation11] sm:$0xff] }
 0x34e   : > { %v1302_v6 = vpop.f32.mrb[15].mxu1 }
 0x34f   : > { %v1353_v7 = vpop.f32.mrb[16].mxu0  ;;  %v1591_v6 = vld [vmem:[#allocation14] sm:$0xff] }
 0x350   : > { %v1360_v11 = vadd.f32 %v1353_v7, %v1304_v63  ;;  %v1355_v12 = vpop.f32.mrb[17].mxu0 }
 0x351   : > { %v1361_v13 = vadd.f32 %v1355_v12, %v1305_v2  ;;  %v1357_v0 = vpop.f32.mrb[18].mxu0 }
 0x352   : > { %v4053_v14 = vadd.f32 %v1366_v10, %v1360_v11  ;;  %v1358_v15 = vpop.f32.mrb[19].mxu0 }
 0x353   : > { %v4055_v16 = vadd.f32 %v1366_v10, %v1361_v13  ;;  %v2696_v37 = vpop.eup %2695 }
 0x354   : > { %v1375_v19 = vmul.f32 %v4053_v14, %v4053_v14  ;;  %v1587_v40 = vmul.f32 %v2696_v37, %v1573_v27 }
 0x355   : > { %v1372_v23 = vadd.f32 %v4055_v16, %v4053_v14  ;;  %v1376_v24 = vmul.f32 %v4055_v16, %v4055_v16 }
 0x357   : > { %1373 = vadd.xlane.f32.xlu1 %v1372_v23  ;;  %v1377_v26 = vadd.f32 %v1376_v24, %v1375_v19  ;;  %v2698_v38 = vpop.eup %2697 }
 0x358   : > { %v1588_v41 = vmul.f32 %v2698_v38, %v1574_v28 }
 0x359   : > { %1378 = vadd.xlane.f32.xlu0 %v1377_v26 }
 0x35a   : > { %v1590_v42 = vpack.c.bf16 %v1588_v41, %v1587_v40 }
 0x35c   : > { %2388 = vmatpush3.bf16.msra.mxu0 %v1590_v42 }
 0x35d   : > { %2393 = vmatprep.subr.mxu0 %v3276_v8 }
 0x35f   : > { %2390 = vmatmul.mubr.msk.bf16.vlgmr.msra.gmra.mrb[20].mxu0 %vm1592_vm9, %v1589_v43  ;;  %vm4337_vm9 = vcmp.lt.s32.totalorder %v3848_v9, 17 }
 0x360   : > { %2395 = vmatprep.mubr.msk.f32.mxu0 %vm4266_vm14, %v3276_v8 }
 0x3e4   : > { %v1374_v45 = vpop.xlane.xlu1 %1373 }
 0x3e5   : > { %2378 = vmatpush3.msra.mxu1 %v1374_v45 }
 0x3e6   : > { %v1379_v48 = vpop.xlane.xlu0 %1378  ;;  %2380 = vmatmul.mubr.msk.f32.vlgmr.msra.gmra.mrb[16].mxu1 %vm4267_vm15, %v4072_v44  ;;  %2382 = vmatprep.subr.mxu1 %v3276_v8 }
 0x3e7   : > { %2383 = vmatpush3.msra.mxu1 %v1379_v48  ;;  %2384 = vmatprep.mubr.msk.f32.mxu1 %vm4266_vm14, %v3276_v8  ;;  %v1718_v48 = vld [vmem:[#allocation17] sm:$0xff]  ;;  %vm4338_vm14 = vmmov %vm4337_vm9 }
 0x3ea   : > { %2385 = vmatmul.mubr.msk.f32.vlgmr.msra.gmra.mrb[18].mxu1 %vm4267_vm15, %v4072_v44  ;;  %vm4339_vm15 = vcmp.gt.f32.partialorder %v3852_v17, 0.5 }
 0x3eb   : > { %1767 = vmatprep.mubr.bf16.mxu1 %v3260_v1  ;;  %vm2327_vm5 = vmpackc.low %vm4339_vm15, %vm3915_vm13  ;;  %vm4343_vm13 = vcmp.lt.s32.totalorder %v3848_v9, 15 }
 0x3ec   : > { %vm4344_vm2 = vmmov %vm4343_vm13 }
 0x3ed   : > { %vm2333_vm15 = vmpackc.low %vm4345_vm12, %vm3873_vm7  ;;  %vm3278_vm7 = vmmov 1  }
 0x432   : > { %v1630_v49 = vpop.f32.mrb[20].mxu0 }
 0x433   : > { %v2391_v50 = vpop.f32.mrb[21].mxu0  ;;  %v1631_v10 = vadd.f32 %v1630_v49, %v1591_v6 }
 0x434   : > { %v1633_v51 = vpop.f32.mrb[22].mxu0 }
 0x435   : > { %v2392_v52 = vpop.f32.mrb[23].mxu0 }
 0x4b9   : > { %v1450_v53 = vpop.f32.mrb[16].mxu1 }
 0x4ba   : > { %v1454_v54 = vmul.f32 0.001953125, %v1450_v53  ;;  %v2381_v56 = vpop.f32.mrb[17].mxu1 }
 0x4bc   : > { %1531 = vperm.xlu1 %2647, %v1454_v54   ;;  %v1526_v60 = vmul.f32 %v1454_v54, %v1454_v54 }
 0x4bd   : > { %v1521_v58 = vpop.f32.mrb[18].mxu1 }
 0x4be   : > { %v1525_v61 = vmul.f32 0.001953125, %v1521_v58  ;;  %v2386_v62 = vpop.f32.mrb[19].mxu1 }
 0x4c0   : > { %v1527_v63 = vsub.f32 %v1525_v61, %v1526_v60  ;;  %1547 = vperm.xlu1 %2647, %v1370_v59  }
 0x4c2   : > { %v1528_v2 = vmax.f32 %v1527_v63, 0.0 }
 0x4c4   : > { %v1536_v5 = vadd.f32 1e-05, %v1528_v2  ;;  %1554 = vperm.xlu1 %2647, %v1371_v4  }
 0x4c6   : > { %2699 = vrsqrt.f32 %v1536_v5 }
 0x4d0   : > { %v2700_v7 = vpop.eup %2699 }
 0x4d1   : > { %1540 = vperm.xlu0 %2646, %v2700_v7  }
 0x4d5   : > { %1638 = vperm.xlu0 %2646, %v1631_v10  }
 0x53b   : > { %v1532_v11 = vpop.permute.xlu1 %1531 }
 0x53c   : > { %v1534_v13 = vsub.f32 %v4053_v14, %v1532_v11  ;;  %v1535_v0 = vsub.f32 %v4055_v16, %v1532_v11 }
 0x53f   : > { %v1548_v12 = vpop.permute.xlu1 %1547 }
 0x543   : > { %v1555_v27 = vpop.permute.xlu1 %1554 }
 0x550   : > { %v1541_v15 = vpop.permute.xlu0 %1540 }
 0x551   : > { %v1543_v19 = vmul.f32 %v1541_v15, %v1534_v13  ;;  %v1544_v23 = vmul.f32 %v1541_v15, %v1535_v0 }
 0x553   : > { %v1550_v24 = vmul.f32 %v1548_v12, %v1543_v19  ;;  %v1551_v26 = vmul.f32 %v1548_v12, %v1544_v23 }
 0x554   : > { %v1639_v41 = vpop.permute.xlu0 %1638 }
 0x555   : > { %v1557_v28 = vadd.f32 %v1555_v27, %v1550_v24  ;;  %v1558_v31 = vadd.f32 %v1555_v27, %v1551_v26 }
 0x557   : > { %v2322_v32 = vmul.f32 -1.442695, %v1557_v28  ;;  %v2323_v33 = vmul.f32 -1.442695, %v1558_v31 }
 0x559   : > { %2701 = vpow2.f32 %v2322_v32 }
 0x55a   : > { %2703 = vpow2.f32 %v2323_v33 }
 0x563   : > { %v2702_v34 = vpop.eup %2701 }
 0x564   : > { %v2704_v35 = vpop.eup %2703  ;;  %v1565_v36 = vadd.f32 1.0, %v2702_v34 }
 0x565   : > { %v1566_v37 = vadd.f32 1.0, %v2704_v35 }
 0x566   : > { %2705 = vrcp.f32 %v1565_v36 }
 0x567   : > { %2707 = vrcp.f32 %v1566_v37 }
 0x570   : > { %v2706_v14 = vpop.eup %2705 }
 0x571   : > { %v2708_v16 = vpop.eup %2707  ;;  %v1571_v38 = vmul.f32 %v2706_v14, %v1557_v28 }
 0x572   : > { %v1572_v40 = vmul.f32 %v2708_v16, %v1558_v31 }
 0x573   : > { %v4084_v42 = vadd.f32 %v1639_v41, %v1571_v38 }
 0x574   : > { %v4086_v43 = vadd.f32 %v1639_v41, %v1572_v40 }
 0x576   : > { %v2653_v45 = vpack.i.bf16 %v4086_v43, %v4084_v42 }
 0x578   : > { %2654 = vrot.lane.b32.xlu0 %v2653_v45, %s3261_s27  ;;  %2649 = vrot.lane.b32.xlu1 %v2653_v45, %s3263_s29  ;;  %s712_s27 = scalar_lea.vmem [#allocation26], %s4363_s15 }
 0x57c   : > { %2664 = vrot.lane.b32.xlu0 %v2653_v45, %s3265_s8  ;;  %2659 = vrot.lane.b32.xlu1 %v2653_v45, %s3262_s23  ;;  %s2045_s23 = sshll.u32 %s712_s27, 4  ;;  %s4184_s23 = int_to_ptr.vmem [resolvable:$true] %s2045_s23 }
 0x580   : > { %2674 = vrot.lane.b32.xlu0 %v2653_v45, %s3269_s24  ;;  %2669 = vrot.lane.b32.xlu1 %v2653_v45, %s3267_s3  ;;  %s4364_s3 = sld [smem:[#allocation49_spill]]  ;;  %s3143_s24 = scalar_lea.vmem %s4184_s23, 256 }
 0x581   : > { %p3144_p11 = scmp.ne.s32.totalorder %s4184_s23, %s3143_s24 }
 0x583   : > { %p3145_p12 = pnand %p3144_p11, %p4365_p0 }
 0x584   : > { %2684 = vrot.lane.b32.xlu0 %v2653_v45, %s3272_s16  ;;  %2679 = vrot.lane.b32.xlu1 %v2653_v45, %s3270_s4  ;;  %s3279_s4 = smov [#allocation26]  }
 0x585   : > { %p3146_p13 = pneg %p3145_p12  ;;  %s3147_s6 = sshll.u32 %s3279_s4, 4  ;;  %s3148_s6 = int_to_ptr.vmem [resolvable:$false] %s3147_s6 }
 0x586   : > { %s4182_s25 = scalar_lea.hbm %s4364_s3, %s2366_s7  ;;  %s3149_s16 = scalar_lea.vmem %s3148_s6, 512 }
 0x587   : > { %p3150_p1 = scmp.lt.s32.totalorder %s4184_s23, %s3148_s6  ;;  %p3151_p3 = scmp.lt.s32.totalorder %s3149_s16, %s3143_s24 }
 0x588   : > { %1721 = vperm.xlu1 %2647, %v1718_v48  }
 0x589   : > { %p3152_p7 = por %p3151_p3, %p3150_p1 }
 0x58b   : > { %p3153_p2 = pnand %p3152_p7, %p3146_p13 }
 0x5ea   : > { %v2655_v49 = vpop.permute.xlu0 %2654  ;;  %v2650_v50 = vpop.permute.xlu1 %2649 }
 0x5eb   : > { %v2657_v51 = vunpack.i.h.bf16 %v2655_v49  ;;  %v2656_v52 = vunpack.i.l.bf16 %v2655_v49  ;;  %v2652_v53 = vunpack.i.h.bf16 %v2650_v50  ;;  %v2651_v54 = vunpack.i.l.bf16 %v2650_v50 }
 0x5ed   : > { %v1655_v56 = vsel %vm757_vm4, %v2656_v52, %v2657_v51  ;;  %v1656_v58 = vsel %vm757_vm4, %v2657_v51, %v2656_v52  ;;  %v1647_v59 = vsel %vm4337_vm9, %v2651_v54, %v2652_v53  ;;  %v1648_v60 = vsel %vm4338_vm14, %v2652_v53, %v2651_v54 }
 0x5ee   : > { %v2328_v61 = vpack.c.bf16 %v1655_v56, %v1647_v59  ;;  %v2331_v62 = vpack.c.bf16 %v1656_v58, %v1648_v60  ;;  %v2665_v63 = vpop.permute.xlu0 %2664  ;;  %v2660_v4 = vpop.permute.xlu1 %2659  ;;  %vm4341_vm4 = vcmp.lt.s32.totalorder %v3848_v9, 1  ;;  %v1975_v59 = vld [vmem:[#allocation23] sm:$0xf] }
 0x5ef   : > { %v2667_v2 = vunpack.i.h.bf16 %v2665_v63  ;;  %v2666_v5 = vunpack.i.l.bf16 %v2665_v63  ;;  %v2662_v6 = vunpack.i.h.bf16 %v2660_v4  ;;  %v2661_v7 = vunpack.i.l.bf16 %v2660_v4  ;;  %vm4342_vm14 = vmmov %vm4341_vm4  ;;  %v1776_v4 = vld [vmem:[#allocation19] sm:$0xff] }
 0x5f0   : > { %2329 = vmatprep.subr.msk.bf16.mxu1 %vm2327_vm5, %v2328_v61  ;;  %vm4346_vm5 = vcmp.gt.f32.partialorder %v3860_v22, 0.5 }
 0x5f1   : > { %v1671_v46 = vsel %vm4341_vm4, %v2666_v5, %v2667_v2  ;;  %v1672_v10 = vsel %vm4342_vm14, %v2667_v2, %v2666_v5  ;;  %v1663_v39 = vsel %vm4343_vm13, %v2661_v7, %v2662_v6  ;;  %v1664_v11 = vsel %vm4344_vm2, %v2662_v6, %v2661_v7  ;;  %2332 = vmatpush1.bf16.msk.msra.mxu1 %vm2330_vm1, %v2331_v62  ;;  %vm2336_vm9 = vmpackc.low %vm4346_vm5, %vm3881_vm8  ;;  %v1976_v6 = vld [vmem:[#allocation25] sm:$0xff] }
 0x5f2   : > { %v2334_v12 = vpack.c.bf16 %v1671_v46, %v1663_v39  ;;  %v2337_v13 = vpack.c.bf16 %v1672_v10, %v1664_v11  ;;  %v2675_v0 = vpop.permute.xlu0 %2674  ;;  %v2670_v15 = vpop.permute.xlu1 %2669  ;;  %vm4347_vm1 = vcmp.lt.s32.totalorder %v3848_v9, 127  ;;  %vm2339_vm14 = vmpackc.low %vm774_vm0, %vm3278_vm7  ;;  %vm4349_vm8 = vcmp.lt.f32.partialorder %v3860_v22, 14.5  ;;  %v1777_v11 = vld [vmem:[#allocation20] sm:$0xff] }
 0x5f3   : > { %v2672_v19 = vunpack.i.h.bf16 %v2670_v15  ;;  %v2671_v23 = vunpack.i.l.bf16 %v2670_v15  ;;  %v2677_v24 = vunpack.i.h.bf16 %v2675_v0  ;;  %v2676_v26 = vunpack.i.l.bf16 %v2675_v0  ;;  %vm4348_vm4 = vmmov %vm4347_vm1 }
 0x5f4   : > { %2335 = vmatprep.subr.msk.bf16.mxu1 %vm2333_vm15, %v2334_v12  ;;  %vm2342_vm13 = vmpackc.low %vm4349_vm8, %vm3278_vm7  ;;  %vm4350_vm2 = vcmp.lt.s32.totalorder %v3848_v9, 113  ;;  %vm4352_vm0 = vcmp.lt.s32.totalorder %v3848_v9, 111  ;;  %vm4354_vm5 = vcmp.lt.s32.totalorder %v3848_v9, 112  ;;  %vm4357_vm7 = vcmp.lt.f32.partialorder %v3854_v18, 14.5 }
 0x5f5   : > { %v1679_v25 = vsel %vm4347_vm1, %v2671_v23, %v2672_v19  ;;  %v1680_v27 = vsel %vm4348_vm4, %v2672_v19, %v2671_v23  ;;  %2338 = vmatpush1.bf16.msk.msra.mxu1 %vm2336_vm9, %v2337_v13  ;;  %v1687_v37 = vsel %vm4350_vm2, %v2676_v26, %v2677_v24  ;;  %vm4351_vm12 = vmmov %vm4350_vm2  ;;  %vm4356_vm1 = vcmp.lt.f32.partialorder %v3852_v17, 14.5 }
 0x5f6   : > { %v2340_v30 = vpack.c.bf16 %v1680_v27, %v4086_v43  ;;  %v2343_v28 = vpack.c.bf16 %v1679_v25, %v4084_v42  ;;  %v2685_v31 = vpop.permute.xlu0 %2684  ;;  %v2680_v32 = vpop.permute.xlu1 %2679  ;;  %v1688_v21 = vsel %vm4351_vm12, %v2677_v24, %v2676_v26  ;;  %vm4353_vm15 = vmmov %vm4352_vm0  ;;  %vm1728_vm8 = vcmask 1043456  }
 0x5f7   : > { %v2687_v33 = vunpack.i.h.bf16 %v2685_v31  ;;  %v2686_v34 = vunpack.i.l.bf16 %v2685_v31  ;;  %v2682_v35 = vunpack.i.h.bf16 %v2680_v32  ;;  %v2681_v36 = vunpack.i.l.bf16 %v2680_v32  ;;  %vm4355_vm9 = vmmov %vm4354_vm5 }
 0x5f8   : > { %2341 = vmatprep.subr.msk.bf16.mxu1 %vm2339_vm14, %v2340_v30  ;;  %vm2345_vm4 = vmpackc.low %vm4356_vm1, %vm3971_vm10  ;;  %vm1724_vm10 = vcmask 588800   ;;  %vm4362_vm2 = vcmask 31744  }
 0x5f9   : > { %v1703_v14 = vsel %vm4352_vm0, %v2686_v34, %v2687_v33  ;;  %v1704_v16 = vsel %vm4353_vm15, %v2687_v33, %v2686_v34  ;;  %v1695_v22 = vsel %vm4354_vm5, %v2681_v36, %v2682_v35  ;;  %v1696_v38 = vsel %vm4355_vm9, %v2682_v35, %v2681_v36  ;;  %2344 = vmatpush1.bf16.msk.msra.mxu1 %vm2342_vm13, %v2343_v28  ;;  %vm2348_vm14 = vmpackc.low %vm4357_vm7, %vm3984_vm3 }
 0x5fa   : > { %v1706_v40 = vsel %vm4016_vm11, %v1704_v16, 0.0  ;;  %v2346_v41 = vpack.c.bf16 %v1696_v38, %v1688_v21  ;;  %v2349_v42 = vpack.c.bf16 %v1695_v22, %v1687_v37  ;;  %v1705_v9 = vsel %vm4027_vm6, %v1703_v14, 0.0 }
 0x5fb   : > { %v1716_v43 = vpack.c.bf16 %v1706_v40, %v1706_v40  ;;  %v1715_v3 = vpack.c.bf16 %v1705_v9, %v1705_v9  ;;  %vm4358_vm3 = vcmask 64512   ;;  %vm4359_vm6 = vmmov 0  }
 0x5fc   : > { %2347 = vmatprep.subr.msk.bf16.mxu1 %vm2345_vm4, %v2346_v41  ;;  %vm4360_vm11 = vcmask 1041408   ;;  %vm4361_vm13 = vmmov %vm4358_vm3 }
 0x5fd   : > { %2350 = vmatpush1.bf16.msk.msra.mxu1 %vm2348_vm14, %v2349_v42  ;;  %v1730_v17 = vsel %vm1728_vm8, %v1715_v3, 0 }
 0x5fe   : > { %2351 = vmatprep.subr.msk.bf16.mxu1 %vm1728_vm8, %v1716_v43 }
 0x601   : > { %1744 = vmatpush1.bf16.msra.mxu1 %v1730_v17 }
 0x604   : > { %2352 = vmatmul.mubr.msk.bf16.vlgmr.msra.gmra.mrb[20].mxu1 %vm1724_vm10, %v1717_v47 }
 0x607   : > { %v1722_v45 = vpop.permute.xlu1 %1721 }
 0x6d7   : > { %v1769_v48 = vpop.f32.mrb[20].mxu1 }
 0x6d8   : > { %v1770_v29 = vadd.f32 %v1769_v48, %v1722_v45  ;;  %v1771_v49 = vpop.f32.mrb[21].mxu1 }
 0x6d9   : > { %v1772_v18 = vadd.f32 %v1771_v49, %v1722_v45  ;;  %v1773_v50 = vpop.f32.mrb[22].mxu1 }
 0x6da   : > { %v1774_v51 = vpop.f32.mrb[23].mxu1  ;;  %v1781_v55 = vmul.f32 %v1770_v29, %v1770_v29 }
 0x6db   : > { %v1778_v52 = vadd.f32 %v1772_v18, %v1770_v29  ;;  %v1782_v53 = vmul.f32 %v1772_v18, %v1772_v18 }
 0x6dd   : > { %1779 = vadd.xlane.f32.xlu0 %v1778_v52  ;;  %v1783_v54 = vadd.f32 %v1782_v53, %v1781_v55 }
 0x6df   : > { %1784 = vadd.xlane.f32.xlu1 %v1783_v54 }
 0x76a   : > { %v1780_v56 = vpop.xlane.xlu0 %1779 }
 0x76b   : > { %2394 = vmatpush3.msra.mxu0 %v1780_v56 }
 0x76c   : > { %v1785_v58 = vpop.xlane.xlu1 %1784  ;;  %2396 = vmatmul.mubr.msk.f32.vlgmr.msra.gmra.mrb[24].mxu0 %vm4358_vm3, %v4072_v44  ;;  %2398 = vmatprep.subr.mxu0 %v3276_v8 }
 0x76d   : > { %2399 = vmatpush3.msra.mxu0 %v1785_v58  ;;  %2400 = vmatprep.mubr.msk.f32.mxu0 %vm4359_vm6, %v3276_v8 }
 0x76e   : > { %2357 = vmatprep.subr.msk.bf16.mxu0 %vm4360_vm11, %v3933_v57 }
 0x770   : > { %2401 = vmatmul.mubr.msk.f32.vlgmr.msra.gmra.mrb[26].mxu0 %vm4361_vm13, %v4072_v44 }
 0x771   : > { %1986 = vmatpush1.bf16.msra.mxu0 %v3976_v20  ;;  %2017 = vmatprep.mubr.bf16.mxu0 %v3260_v1 }
 0x774   : > { %2358 = vmatmul.mubr.msk.bf16.vlgmr.msra.gmra.mrb[28].mxu0 %vm4362_vm2, %v1975_v59 }
 0x83f   : > { %v1852_v60 = vpop.f32.mrb[24].mxu0 }
 0x840   : > { %v1856_v61 = vmul.f32 0.001953125, %v1852_v60  ;;  %v2397_v62 = vpop.f32.mrb[25].mxu0 }
 0x842   : > { %1933 = vperm.xlu0 %2646, %v1856_v61   ;;  %v1928_v8 = vmul.f32 %v1856_v61, %v1856_v61 }
 0x843   : > { %v1923_v63 = vpop.f32.mrb[26].mxu0 }
 0x844   : > { %v1927_v2 = vmul.f32 0.001953125, %v1923_v63  ;;  %v2402_v5 = vpop.f32.mrb[27].mxu0 }
 0x846   : > { %v1929_v57 = vsub.f32 %v1927_v2, %v1928_v8  ;;  %1949 = vperm.xlu0 %2646, %v1776_v4  }
 0x847   : > { %v2019_v44 = vpop.f32.mrb[28].mxu0 }
 0x848   : > { %v1930_v7 = vmax.f32 %v1929_v57, 0.0  ;;  %v2021_v1 = vpop.f32.mrb[29].mxu0 }
 0x849   : > { %v2023_v46 = vpop.f32.mrb[30].mxu0 }
 0x84a   : > { %v1938_v20 = vadd.f32 1e-05, %v1930_v7  ;;  %1979 = vperm.xlu0 %2646, %v1976_v6   ;;  %v2024_v10 = vpop.f32.mrb[31].mxu0 }
 0x84c   : > { %2709 = vrsqrt.f32 %v1938_v20 }
 0x856   : > { %v2710_v39 = vpop.eup %2709 }
 0x857   : > { %1942 = vperm.xlu1 %2647, %v2710_v39  }
 0x85b   : > { %1956 = vperm.xlu1 %2647, %v1777_v11  }
 0x8c1   : > { %v1934_v12 = vpop.permute.xlu0 %1933 }
 0x8c2   : > { %v1936_v13 = vsub.f32 %v1770_v29, %v1934_v12  ;;  %v1937_v0 = vsub.f32 %v1772_v18, %v1934_v12 }
 0x8c5   : > { %v1950_v24 = vpop.permute.xlu0 %1949 }
 0x8c9   : > { %v1980_v37 = vpop.permute.xlu0 %1979 }
 0x8ca   : > { %v2020_v16 = vadd.f32 %v2019_v44, %v1980_v37  ;;  %v2022_v38 = vadd.f32 %v2021_v1, %v1980_v37 }
 0x8d6   : > { %v1943_v15 = vpop.permute.xlu1 %1942 }
 0x8d7   : > { %v1945_v19 = vmul.f32 %v1943_v15, %v1936_v13  ;;  %v1946_v23 = vmul.f32 %v1943_v15, %v1937_v0 }
 0x8d9   : > { %v1952_v26 = vmul.f32 %v1950_v24, %v1945_v19  ;;  %v1953_v25 = vmul.f32 %v1950_v24, %v1946_v23 }
 0x8da   : > { %v1957_v27 = vpop.permute.xlu1 %1956 }
 0x8db   : > { %v1959_v30 = vadd.f32 %v1957_v27, %v1952_v26  ;;  %v1960_v28 = vadd.f32 %v1957_v27, %v1953_v25 }
 0x8dd   : > { %v2355_v31 = vmul.f32 -1.442695, %v1959_v30  ;;  %v2356_v32 = vmul.f32 -1.442695, %v1960_v28 }
 0x8df   : > { %2711 = vpow2.f32 %v2355_v31 }
 0x8e0   : > { %2713 = vpow2.f32 %v2356_v32 }
 0x8e9   : > { %v2712_v33 = vpop.eup %2711 }
 0x8ea   : > { %v2714_v34 = vpop.eup %2713  ;;  %v1967_v35 = vadd.f32 1.0, %v2712_v33 }
 0x8eb   : > { %v1968_v36 = vadd.f32 1.0, %v2714_v34 }
 0x8ec   : > { %2715 = vrcp.f32 %v1967_v35 }
 0x8ed   : > { %2717 = vrcp.f32 %v1968_v36 }
 0x8f6   : > { %v2716_v21 = vpop.eup %2715 }
 0x8f7   : > { %v2718_v14 = vpop.eup %2717  ;;  %v1973_v22 = vmul.f32 %v2716_v21, %v1959_v30 }
 0x8f8   : > { %v1974_v40 = vmul.f32 %v2718_v14, %v1960_v28 }
 0x8f9   : > { %v2026_v41 = vadd.f32 %v2020_v16, %v1973_v22 }
 0x8fa   : > { %v2027_v42 = vadd.f32 %v2022_v38, %v1974_v40 }
 0x8fb   : > { %2028 = vst [vmem:[%s712_s27] sm:$0xff] %v2026_v41 }
 0x8fc   : > { %2029 = vst [vmem:[%s712_s27 + $0x8] sm:$0xff] %v2027_v42 }
 0x8fd   : > { %3156 = shalt.err (!%p3153_p2)
}
 0x8fe   : > { %s3157_s17 = scalar_lea.hbm %s4182_s25, 256  ;;  %s3161_s7 = scalar_lea.hbm %s4364_s3, 512 }
 0x8ff   : > { %p3158_p6 = scmp.ne.s32.totalorder %s4182_s25, %s3157_s17  ;;  %p3162_p9 = scmp.lt.u32.totalorder %s4182_s25, %s4364_s3 }
 0x900   : > { %p3163_p10 = scmp.lt.u32.totalorder %s3161_s7, %s3157_s17  ;;  %p3165_p11 = scmp.lt.u32.totalorder %s3157_s17, %s4182_s25 }
 0x901   : > { %p3159_p4 = pnand %p3158_p6, %p4365_p0 }
 0x902   : > { %p3164_p8 = por %p3163_p10, %p3162_p9 }
 0x903   : > { %p3160_p5 = pneg %p3159_p4 }
 0x904   : > { %p3166_p12 = por %p3165_p11, %p3164_p8 }
 0x906   : > { %p3167_p13 = pnand %p3166_p12, %p3160_p5 }
 0x908   : > { %3170 = shalt.err (!%p3167_p13)
}
 0x909   : > { %2459 = dma.vmem_to_hbm [thread:$0]  (%p4365_p0), %s4184_s23, 256, %s4182_s25, %s2031_s0  }
 0x90a PF: > { %s4366_s29 = sld [smem:[#allocation37_spill]]  ;;  %p4367_p1 = scmp.ne.s32.totalorder %s4299_s18, 0 }
 0x90b   : > { %p4368_p3 = scmp.ge.s32.totalorder %s3241_s21, 2 }
 0x90d   : > { %p2509_p7 = pnand %p4368_p3, %p4367_p1 }
 0x910   : > { %s2057_s8 = sand.u32 1, %s4366_s29  }
 0x911   : > { %s2058_s24 = scalar_lea.sflag [#allocation4], %s2057_s8 }
 0x912   : > { %3224 = dma.done.wait (!%p2509_p7), %s2058_s24, 256  }
 0x913   : > { %3226 = vsyncadd (!%p2509_p7), %s2058_s24, 4294967040  ;;  %p37_p2 = scmp.ge.s32.totalorder %s3665_s30, 4   ;;  %s4369_s18 = smov %s3233_s19 }
 0x914   : > { %s4370_s19 = smov %s3237_s20  ;;  %s4371_s20 = smov %s3677_s1 }
 0x915   : > { %s4372_s21 = smov %s3665_s30  ;;  %39 = sbr.rel (!%p37_p2) target bundleno = 24 (0x18), region = 190 }
 0x91c   :  { %2063 = vsyncpa [#allocation3], 1 }
 0x91d   :  { %2065 = vsyncpa [#allocation3 + $0x1], 1 }
 0x91e   :  { %2066 = vsyncpa [#allocation6], 1 }
 0x91f   :  { %2068 = vsyncpa [#allocation6 + $0x1], 1 }
 0x920   :  { %2069 = vsyncpa [#allocation9], 1 }
 0x921   :  { %2070 = vsyncpa [#allocation12], 1 }
 0x922   :  { %2071 = vsyncpa [#allocation15], 1 }
 0x923   :  { %2072 = vsyncpa [#allocation18], 1 }
 0x924   :  { %2073 = vsyncpa [#allocation21], 1 }
 0x925   :  { %2074 = vsyncpa [#allocation24], 1 }
 0x926   :  { %2075 = vsyncpa [#allocation4], 1 }
 0x927   :  { %2077 = vsyncpa [#allocation4 + $0x1], 1 }

</bundles_post_ra>
